<compile_context>
chip_gen: v6e
topology: v6e:2x2x1
jax: 0.10.0
libtpu: 0.0.40
codegen_flags: <defaults>
</compile_context>

<pallas_src>
import jax
import jax.numpy as jnp
from jax import lax
from jax.experimental import pallas as pl
from jax.experimental.pallas import tpu as pltpu


def _make_kernel(H, W, Cin, Cout, P_pad):
    Wp = W + 2                       # padded row pitch
    L = H * Wp                       # flattened span covering all H output rows (pitch Wp)
    OFFSETS = tuple(dh * Wp + dw for dh in range(3) for dw in range(3))   # tap t = 3*dh + dw

    def kernel(x_ref,                # (1, Cin, L)     bf16  width-pre-padded input, pitch Wp
               w1_ref,               # (Cout, 9*Cin)   bf16  fused tap-major conv1 weights
               w2_ref,               # (Cout, 9*Cout)  bf16  fused tap-major conv2 weights
               s1_ref, b1_ref,       # (Cin, 1)  f32   BN1 folded scale / bias
               s2_ref, b2_ref,       # (Cout, 1) f32   BN2 folded scale / bias
               a_ref,                # (Cout, 1) f32   PReLU slopes
               s3_ref, b3_ref,       # (Cout, 1) f32   BN3 folded scale / bias
               o_ref,                # (1, Cout, L)    f32   (junk pad cols dropped in wrapper)
               pad1_ref,             # scratch (Cin,  P_pad) bf16 : padded BN1(x) slab
               stk1_ref,             # scratch (9*Cin, L)    bf16 : stacked conv1 tap windows
               pad2_ref,             # scratch (Cout, P_pad) bf16 : padded PReLU(BN2(conv1)) slab
               stk2_ref):            # scratch (9*Cout, L)   bf16 : stacked conv2 tap windows
        f32, bf16 = jnp.float32, jnp.bfloat16

        # Column-within-row index; columns >= W are the 2 per-row pad/junk lanes.
        col = lax.broadcasted_iota(jnp.int32, (1, L), 1) % Wp
        interior = col < W

        # ---------------- BN1 + padded slab for conv1 (3 bulk stores) ----------------
        x = x_ref[0].astype(f32)                           # (Cin, L), lane-dense
        xa = x * s1_ref[...] + b1_ref[...]                 # BN1 affine in f32
        xa = jnp.where(interior, xa, 0.0).astype(bf16)     # pad cols -> exact zeros (borders)
        # Storing at offset Wp+1: row r's 2 masked pad cols land exactly on the right
        # border of slab row r+1 and the left border of slab row r+2.
        pad1_ref[:, 0:Wp + 1] = jnp.zeros((Cin, Wp + 1), bf16)         # top row + left border
        pad1_ref[:, Wp + 1:Wp + 1 + L] = xa                            # all interior rows
        pad1_ref[:, Wp + 1 + L:P_pad] = jnp.zeros((Cin, P_pad - (Wp + 1 + L)), bf16)  # tail

        # ---------------- Conv1: stack 9 shifted windows, ONE K=9*Cin MXU matmul ------
        for t, off in enumerate(OFFSETS):                  # 9 bulk lane-window copies
            stk1_ref[t * Cin:(t + 1) * Cin, :] = pad1_ref[:, off:off + L]
        y = jnp.dot(w1_ref[...], stk1_ref[...], preferred_element_type=f32)   # (Cout, L)

        # ---------------- BN2 + PReLU ----------------
        y = y * s2_ref[...] + b2_ref[...]
        y = jnp.where(y >= 0.0, y, a_ref[...] * y)

        # ---------------- padded slab for conv2 (same 3-bulk-store pattern) ----------
        y_m = jnp.where(interior, y, 0.0).astype(bf16)     # junk cols -> border zeros
        pad2_ref[:, 0:Wp + 1] = jnp.zeros((Cout, Wp + 1), bf16)
        pad2_ref[:, Wp + 1:Wp + 1 + L] = y_m
        pad2_ref[:, Wp + 1 + L:P_pad] = jnp.zeros((Cout, P_pad - (Wp + 1 + L)), bf16)

        # ---------------- Conv2: ONE K=9*Cout matmul ----------------
        for t, off in enumerate(OFFSETS):
            stk2_ref[t * Cout:(t + 1) * Cout, :] = pad2_ref[:, off:off + L]
        z = jnp.dot(w2_ref[...], stk2_ref[...], preferred_element_type=f32)   # (Cout, L)

        # ---------------- BN3 + single lane-dense bulk store ----------------
        z = z * s3_ref[...] + b3_ref[...]
        o_ref[0, :, :] = z.astype(o_ref.dtype)             # junk cols dropped by wrapper

    return kernel


def feature_encoder_block(x_nchw, w1_oihw, w2_oihw,
                          s1, b1, s2, b2, prelu_a, s3, b3):
    """x_nchw: (N, Cin, H, W) f32; conv weights in PyTorch OIHW. Returns NCHW f32.

    Precision policy: bf16 conv activations/weights (input DMA'd as bf16), f32
    accumulation and f32 elementwise BN / PReLU math.
    """
    N, Cin, H, W = x_nchw.shape
    Cout = w1_oihw.shape[0]
    Wp = W + 2
    L = H * Wp                        # flattened, width-pre-padded spatial length
    P = (H + 2) * Wp                  # full padded slab length
    P_pad = ((P + 2 + 127) // 128) * 128   # slab columns (covers last tap window, lane-aligned)

    # Width-pre-pad to pitch Wp (2 trailing zero cols per row) so the kernel builds the
    # padded slab with bulk stores; bf16 halves input DMA bytes + VMEM footprint.
    x_pp = jnp.pad(x_nchw, ((0, 0), (0, 0), (0, 0), (0, 2)))
    x_flat = x_pp.reshape(N, Cin, L).astype(jnp.bfloat16)

    # Fused tap-major weights: K index = (3*dh + dw)*C + c  ->  (Cout, 9*C), bf16.
    w1_f = jnp.transpose(w1_oihw, (0, 2, 3, 1)).reshape(Cout, 9 * Cin).astype(jnp.bfloat16)
    w2_f = jnp.transpose(w2_oihw, (0, 2, 3, 1)).reshape(Cout, 9 * Cout).astype(jnp.bfloat16)

    colv = lambda v: v.reshape(-1, 1).astype(jnp.float32)
    full = lambda shape: pl.BlockSpec(shape, lambda n: (0,) * len(shape))

    kernel = _make_kernel(H, W, Cin, Cout, P_pad)

    out_flat = pl.pallas_call(
        kernel,
        out_shape=jax.ShapeDtypeStruct((N, Cout, L), jnp.float32),
        grid_spec=pltpu.PrefetchScalarGridSpec(
            num_scalar_prefetch=0,
            grid=(N,),                 # one image per step; keeps grid >= 2 for v7x's 2 TCs
            in_specs=[
                pl.BlockSpec((1, Cin, L), lambda n: (n, 0, 0)),
                full((Cout, 9 * Cin)),
                full((Cout, 9 * Cout)),
                full((Cin, 1)), full((Cin, 1)),
                full((Cout, 1)), full((Cout, 1)),
                full((Cout, 1)),
                full((Cout, 1)), full((Cout, 1)),
            ],
            out_specs=pl.BlockSpec((1, Cout, L), lambda n: (n, 0, 0)),
            scratch_shapes=[
                pltpu.VMEM((Cin, P_pad), jnp.bfloat16),
                pltpu.VMEM((9 * Cin, L), jnp.bfloat16),
                pltpu.VMEM((Cout, P_pad), jnp.bfloat16),
                pltpu.VMEM((9 * Cout, L), jnp.bfloat16),
            ],
        ),
        compiler_params=pltpu.CompilerParams(
            dimension_semantics=("parallel",)),   # independent batch items
    )(x_flat, w1_f, w2_f,
      colv(s1), colv(b1), colv(s2), colv(b2), colv(prelu_a), colv(s3), colv(b3))

    # Drop the 2 junk columns per row; reshape back to NCHW.
    return out_flat.reshape(N, Cout, H, Wp)[..., :W]


def _fold_bn(gamma, beta, mean, var, eps=1e-5):
    s = gamma / jnp.sqrt(var + eps)
    b = beta - mean * s
    return s, b


def _reference_forward(x_nchw, w1_oihw, w2_oihw,
                       s1, b1, s2, b2, prelu_a, s3, b3):
    # Matches the kernel's precision policy: bf16 conv activations/weights,
    # f32 accumulation, f32 elementwise BN / PReLU.
    def bn(x, s, b):
        return x * s[None, :, None, None] + b[None, :, None, None]

    def conv(x, w):
        return lax.conv_general_dilated(
            x.astype(jnp.bfloat16), w.astype(jnp.bfloat16),
            window_strides=(1, 1), padding=((1, 1), (1, 1)),
            dimension_numbers=("NCHW", "OIHW", "NCHW"),
            preferred_element_type=jnp.float32)

    y = bn(x_nchw, s1, b1)
    y = conv(y, w1_oihw)
    y = bn(y, s2, b2)
    y = jnp.where(y >= 0, y, prelu_a[None, :, None, None] * y)
    y = conv(y, w2_oihw)
    y = bn(y, s3, b3)
    return y


if __name__ == "__main__":
    # Small shapes consistent with the module (inp -> out channels, 3x3 convs).
    N, Cin, Cout, H, W = 2, 16, 8, 16, 16

    key = jax.random.PRNGKey(0)
    keys = jax.random.split(key, 12)

    x = jax.random.normal(keys[0], (N, Cin, H, W), jnp.float32)

    # Conv weights (PyTorch OIHW), deterministic init.
    w1_oihw = 0.1 * jax.random.normal(keys[1], (Cout, Cin, 3, 3), jnp.float32)
    w2_oihw = 0.1 * jax.random.normal(keys[2], (Cout, Cout, 3, 3), jnp.float32)

    # BatchNorm params (affine + running stats), eval-mode folding.
    def bn_params(kg, kb, km, kv, c):
        gamma = 1.0 + 0.1 * jax.random.normal(kg, (c,), jnp.float32)
        beta = 0.1 * jax.random.normal(kb, (c,), jnp.float32)
        mean = 0.1 * jax.random.normal(km, (c,), jnp.float32)
        var = 1.0 + 0.1 * jax.random.uniform(kv, (c,), jnp.float32)
        return _fold_bn(gamma, beta, mean, var)

    s1, b1 = bn_params(keys[3], keys[4], keys[5], keys[6], Cin)
    s2, b2 = bn_params(keys[7], keys[8], keys[9], keys[10], Cout)
    k2 = jax.random.split(keys[11], 4)
    s3, b3 = bn_params(k2[0], k2[1], k2[2], k2[3], Cout)
    prelu_a = jnp.full((Cout,), 0.25, jnp.float32)   # PyTorch PReLU default init

    out = feature_encoder_block(x, w1_oihw, w2_oihw,
                                s1, b1, s2, b2, prelu_a, s3, b3)
    out = jax.block_until_ready(out)

    # Reference sees the same bf16-rounded input the kernel is fed (stated precision policy).
    x_ref_in = x.astype(jnp.bfloat16).astype(jnp.float32)
    ref = _reference_forward(x_ref_in, w1_oihw, w2_oihw,
                             s1, b1, s2, b2, prelu_a, s3, b3)
    ref = jax.block_until_ready(ref)

    assert out.shape == (N, Cout, H, W)
    assert jnp.allclose(out, ref, atol=2e-2, rtol=2e-2), (
        float(jnp.max(jnp.abs(out - ref))))

    print("KERNEL_OK")
</pallas_src>

<mosaic_0001>
module attributes {stable_mosaic.version = 11 : i64} {
  func.func @kernel(%arg0: i32, %arg1: memref<1x16x288xbf16, #tpu.memory_space<vmem>>, %arg2: memref<8x144xbf16, #tpu.memory_space<vmem>>, %arg3: memref<8x72xbf16, #tpu.memory_space<vmem>>, %arg4: memref<16x1xf32, #tpu.memory_space<vmem>>, %arg5: memref<16x1xf32, #tpu.memory_space<vmem>>, %arg6: memref<8x1xf32, #tpu.memory_space<vmem>>, %arg7: memref<8x1xf32, #tpu.memory_space<vmem>>, %arg8: memref<8x1xf32, #tpu.memory_space<vmem>>, %arg9: memref<8x1xf32, #tpu.memory_space<vmem>>, %arg10: memref<8x1xf32, #tpu.memory_space<vmem>>, %arg11: memref<1x8x288xf32, #tpu.memory_space<vmem>>, %arg12: memref<16x384xbf16, #tpu.memory_space<vmem>>, %arg13: memref<144x288xbf16, #tpu.memory_space<vmem>>, %arg14: memref<8x384xbf16, #tpu.memory_space<vmem>>, %arg15: memref<72x288xbf16, #tpu.memory_space<vmem>>) attributes {dimension_semantics = [#tpu.dimension_semantics<parallel>], iteration_bounds = array<i64: 2>, scalar_prefetch = 0 : i64, scratch_operands = 4 : i64, tpu.core_type = #tpu.core_type<tc>, window_params = [{transform_indices = @transform_0, window_bounds = array<i64: 1, 16, 288>}, {pipeline_mode = #tpu.pipeline_mode<synchronous>, transform_indices = @transform_1, window_bounds = array<i64: 8, 144>}, {pipeline_mode = #tpu.pipeline_mode<synchronous>, transform_indices = @transform_2, window_bounds = array<i64: 8, 72>}, {pipeline_mode = #tpu.pipeline_mode<synchronous>, transform_indices = @transform_3, window_bounds = array<i64: 16, 1>}, {pipeline_mode = #tpu.pipeline_mode<synchronous>, transform_indices = @transform_4, window_bounds = array<i64: 16, 1>}, {pipeline_mode = #tpu.pipeline_mode<synchronous>, transform_indices = @transform_5, window_bounds = array<i64: 8, 1>}, {pipeline_mode = #tpu.pipeline_mode<synchronous>, transform_indices = @transform_6, window_bounds = array<i64: 8, 1>}, {pipeline_mode = #tpu.pipeline_mode<synchronous>, transform_indices = @transform_7, window_bounds = array<i64: 8, 1>}, {pipeline_mode = #tpu.pipeline_mode<synchronous>, transform_indices = @transform_8, window_bounds = array<i64: 8, 1>}, {pipeline_mode = #tpu.pipeline_mode<synchronous>, transform_indices = @transform_9, window_bounds = array<i64: 8, 1>}, {transform_indices = @transform_10, window_bounds = array<i64: 1, 8, 288>}]} {
    %0 = tpu.iota {dimensions = array<i32: 1>} : vector<1x288xi32>
    %c18_i32 = arith.constant 18 : i32
    %c0_i32 = arith.constant 0 : i32
    %1 = arith.cmpi eq, %c18_i32, %c0_i32 : i32
    %c1_i32 = arith.constant 1 : i32
    %2 = arith.select %1, %c1_i32, %c18_i32 : i32
    %3 = vector.broadcast %2 : i32 to vector<1x288xi32>
    %4 = arith.remsi %0, %3 : vector<1x288xi32>
    %c0_i32_0 = arith.constant 0 : i32
    %5 = vector.broadcast %c0_i32_0 : i32 to vector<1x288xi32>
    %6 = arith.cmpi ne, %4, %5 : vector<1x288xi32>
    %c0_i32_1 = arith.constant 0 : i32
    %7 = vector.broadcast %c0_i32_1 : i32 to vector<1x288xi32>
    %8 = arith.cmpi slt, %4, %7 : vector<1x288xi32>
    %c0_i32_2 = arith.constant 0 : i32
    %9 = arith.cmpi slt, %2, %c0_i32_2 : i32
    %10 = vector.broadcast %9 : i1 to vector<1x288xi1>
    %11 = vector.broadcast %10 : vector<1x288xi1> to vector<1x288xi1>
    %12 = arith.xori %8, %11 : vector<1x288xi1>
    %13 = arith.andi %12, %6 : vector<1x288xi1>
    %14 = vector.broadcast %2 : i32 to vector<1x288xi32>
    %15 = arith.addi %4, %14 : vector<1x288xi32>
    %16 = arith.select %13, %15, %4 : vector<1x288xi1>, vector<1x288xi32>
    %c16_i32 = arith.constant 16 : i32
    %17 = vector.broadcast %c16_i32 : i32 to vector<1x288xi32>
    %18 = arith.cmpi slt, %16, %17 : vector<1x288xi32>
    %c0 = arith.constant 0 : index
    %c0_3 = arith.constant 0 : index
    %c0_4 = arith.constant 0 : index
    %19 = vector.load %arg1[%c0, %c0_3, %c0_4] : memref<1x16x288xbf16, #tpu.memory_space<vmem>>, vector<1x16x288xbf16>
    %20 = vector.shape_cast %19 : vector<1x16x288xbf16> to vector<16x288xbf16>
    %21 = arith.extf %20 : vector<16x288xbf16> to vector<16x288xf32>
    %c0_5 = arith.constant 0 : index
    %c0_6 = arith.constant 0 : index
    %22 = vector.load %arg4[%c0_5, %c0_6] : memref<16x1xf32, #tpu.memory_space<vmem>>, vector<16x1xf32>
    %23 = vector.broadcast %22 : vector<16x1xf32> to vector<16x288xf32>
    %24 = arith.mulf %21, %23 : vector<16x288xf32>
    %c0_7 = arith.constant 0 : index
    %c0_8 = arith.constant 0 : index
    %25 = vector.load %arg5[%c0_7, %c0_8] : memref<16x1xf32, #tpu.memory_space<vmem>>, vector<16x1xf32>
    %26 = vector.broadcast %25 : vector<16x1xf32> to vector<16x288xf32>
    %27 = arith.addf %24, %26 : vector<16x288xf32>
    %cst = arith.constant 0.000000e+00 : f32
    %28 = vector.shape_cast %18 : vector<1x288xi1> to vector<1x288xi1>
    %29 = vector.broadcast %28 : vector<1x288xi1> to vector<16x288xi1>
    %30 = vector.broadcast %cst : f32 to vector<16x288xf32>
    %31 = arith.select %29, %27, %30 : vector<16x288xi1>, vector<16x288xf32>
    %32 = arith.truncf %31 : vector<16x288xf32> to vector<16x288xbf16>
    %cst_9 = arith.constant 0.000000e+00 : bf16
    %33 = vector.broadcast %cst_9 : bf16 to vector<16x19xbf16>
    %c0_10 = arith.constant 0 : index
    %c0_11 = arith.constant 0 : index
    %34 = vector.load %arg12[%c0_10, %c0_11] : memref<16x384xbf16, #tpu.memory_space<vmem>>, vector<16x19xbf16>
    tpu.vector_store %arg12[%c0_10, %c0_11], %33 {strides = array<i32>} : memref<16x384xbf16, #tpu.memory_space<vmem>>, vector<16x19xbf16>,
    %c0_12 = arith.constant 0 : index
    %c19 = arith.constant 19 : index
    %35 = vector.load %arg12[%c0_12, %c19] : memref<16x384xbf16, #tpu.memory_space<vmem>>, vector<16x288xbf16>
    tpu.vector_store %arg12[%c0_12, %c19], %32 {strides = array<i32>} : memref<16x384xbf16, #tpu.memory_space<vmem>>, vector<16x288xbf16>,
    %cst_13 = arith.constant 0.000000e+00 : bf16
    %36 = vector.broadcast %cst_13 : bf16 to vector<16x77xbf16>
    %c0_14 = arith.constant 0 : index
    %c307 = arith.constant 307 : index
    %37 = vector.load %arg12[%c0_14, %c307] : memref<16x384xbf16, #tpu.memory_space<vmem>>, vector<16x77xbf16>
    tpu.vector_store %arg12[%c0_14, %c307], %36 {strides = array<i32>} : memref<16x384xbf16, #tpu.memory_space<vmem>>, vector<16x77xbf16>,
    %c0_15 = arith.constant 0 : index
    %c0_16 = arith.constant 0 : index
    %38 = vector.load %arg12[%c0_15, %c0_16] : memref<16x384xbf16, #tpu.memory_space<vmem>>, vector<16x288xbf16>
    %c0_17 = arith.constant 0 : index
    %c0_18 = arith.constant 0 : index
    %39 = vector.load %arg13[%c0_17, %c0_18] : memref<144x288xbf16, #tpu.memory_space<vmem>>, vector<16x288xbf16>
    tpu.vector_store %arg13[%c0_17, %c0_18], %38 {strides = array<i32>} : memref<144x288xbf16, #tpu.memory_space<vmem>>, vector<16x288xbf16>,
    %c0_19 = arith.constant 0 : index
    %c1 = arith.constant 1 : index
    %40 = vector.load %arg12[%c0_19, %c1] : memref<16x384xbf16, #tpu.memory_space<vmem>>, vector<16x288xbf16>
    %c16 = arith.constant 16 : index
    %c0_20 = arith.constant 0 : index
    %41 = vector.load %arg13[%c16, %c0_20] : memref<144x288xbf16, #tpu.memory_space<vmem>>, vector<16x288xbf16>
    tpu.vector_store %arg13[%c16, %c0_20], %40 {strides = array<i32>} : memref<144x288xbf16, #tpu.memory_space<vmem>>, vector<16x288xbf16>,
    %c0_21 = arith.constant 0 : index
    %c2 = arith.constant 2 : index
    %42 = vector.load %arg12[%c0_21, %c2] : memref<16x384xbf16, #tpu.memory_space<vmem>>, vector<16x288xbf16>
    %c32 = arith.constant 32 : index
    %c0_22 = arith.constant 0 : index
    %43 = vector.load %arg13[%c32, %c0_22] : memref<144x288xbf16, #tpu.memory_space<vmem>>, vector<16x288xbf16>
    tpu.vector_store %arg13[%c32, %c0_22], %42 {strides = array<i32>} : memref<144x288xbf16, #tpu.memory_space<vmem>>, vector<16x288xbf16>,
    %c0_23 = arith.constant 0 : index
    %c18 = arith.constant 18 : index
    %44 = vector.load %arg12[%c0_23, %c18] : memref<16x384xbf16, #tpu.memory_space<vmem>>, vector<16x288xbf16>
    %c48 = arith.constant 48 : index
    %c0_24 = arith.constant 0 : index
    %45 = vector.load %arg13[%c48, %c0_24] : memref<144x288xbf16, #tpu.memory_space<vmem>>, vector<16x288xbf16>
    tpu.vector_store %arg13[%c48, %c0_24], %44 {strides = array<i32>} : memref<144x288xbf16, #tpu.memory_space<vmem>>, vector<16x288xbf16>,
    %c0_25 = arith.constant 0 : index
    %c19_26 = arith.constant 19 : index
    %46 = vector.load %arg12[%c0_25, %c19_26] : memref<16x384xbf16, #tpu.memory_space<vmem>>, vector<16x288xbf16>
    %c64 = arith.constant 64 : index
    %c0_27 = arith.constant 0 : index
    %47 = vector.load %arg13[%c64, %c0_27] : memref<144x288xbf16, #tpu.memory_space<vmem>>, vector<16x288xbf16>
    tpu.vector_store %arg13[%c64, %c0_27], %46 {strides = array<i32>} : memref<144x288xbf16, #tpu.memory_space<vmem>>, vector<16x288xbf16>,
    %c0_28 = arith.constant 0 : index
    %c20 = arith.constant 20 : index
    %48 = vector.load %arg12[%c0_28, %c20] : memref<16x384xbf16, #tpu.memory_space<vmem>>, vector<16x288xbf16>
    %c80 = arith.constant 80 : index
    %c0_29 = arith.constant 0 : index
    %49 = vector.load %arg13[%c80, %c0_29] : memref<144x288xbf16, #tpu.memory_space<vmem>>, vector<16x288xbf16>
    tpu.vector_store %arg13[%c80, %c0_29], %48 {strides = array<i32>} : memref<144x288xbf16, #tpu.memory_space<vmem>>, vector<16x288xbf16>,
    %c0_30 = arith.constant 0 : index
    %c36 = arith.constant 36 : index
    %50 = vector.load %arg12[%c0_30, %c36] : memref<16x384xbf16, #tpu.memory_space<vmem>>, vector<16x288xbf16>
    %c96 = arith.constant 96 : index
    %c0_31 = arith.constant 0 : index
    %51 = vector.load %arg13[%c96, %c0_31] : memref<144x288xbf16, #tpu.memory_space<vmem>>, vector<16x288xbf16>
    tpu.vector_store %arg13[%c96, %c0_31], %50 {strides = array<i32>} : memref<144x288xbf16, #tpu.memory_space<vmem>>, vector<16x288xbf16>,
    %c0_32 = arith.constant 0 : index
    %c37 = arith.constant 37 : index
    %52 = vector.load %arg12[%c0_32, %c37] : memref<16x384xbf16, #tpu.memory_space<vmem>>, vector<16x288xbf16>
    %c112 = arith.constant 112 : index
    %c0_33 = arith.constant 0 : index
    %53 = vector.load %arg13[%c112, %c0_33] : memref<144x288xbf16, #tpu.memory_space<vmem>>, vector<16x288xbf16>
    tpu.vector_store %arg13[%c112, %c0_33], %52 {strides = array<i32>} : memref<144x288xbf16, #tpu.memory_space<vmem>>, vector<16x288xbf16>,
    %c0_34 = arith.constant 0 : index
    %c38 = arith.constant 38 : index
    %54 = vector.load %arg12[%c0_34, %c38] : memref<16x384xbf16, #tpu.memory_space<vmem>>, vector<16x288xbf16>
    %c128 = arith.constant 128 : index
    %c0_35 = arith.constant 0 : index
    %55 = vector.load %arg13[%c128, %c0_35] : memref<144x288xbf16, #tpu.memory_space<vmem>>, vector<16x288xbf16>
    tpu.vector_store %arg13[%c128, %c0_35], %54 {strides = array<i32>} : memref<144x288xbf16, #tpu.memory_space<vmem>>, vector<16x288xbf16>,
    %c0_36 = arith.constant 0 : index
    %c0_37 = arith.constant 0 : index
    %56 = vector.load %arg2[%c0_36, %c0_37] : memref<8x144xbf16, #tpu.memory_space<vmem>>, vector<8x144xbf16>
    %c0_38 = arith.constant 0 : index
    %c0_39 = arith.constant 0 : index
    %57 = vector.load %arg13[%c0_38, %c0_39] : memref<144x288xbf16, #tpu.memory_space<vmem>>, vector<144x288xbf16>
    %cst_40 = arith.constant dense<0.000000e+00> : vector<8x288xf32>
    %58 = tpu.matmul %56, %57, %cst_40 {dimension_numbers = #tpu.dot_dimension_numbers<[1], [0], [0], [1], [0, 0, 1, 1], [], []>} : vector<8x144xbf16>, vector<144x288xbf16>, vector<8x288xf32> -> vector<8x288xf32>
    %c0_41 = arith.constant 0 : index
    %c0_42 = arith.constant 0 : index
    %59 = vector.load %arg6[%c0_41, %c0_42] : memref<8x1xf32, #tpu.memory_space<vmem>>, vector<8x1xf32>
    %60 = vector.broadcast %59 : vector<8x1xf32> to vector<8x288xf32>
    %61 = arith.mulf %58, %60 : vector<8x288xf32>
    %c0_43 = arith.constant 0 : index
    %c0_44 = arith.constant 0 : index
    %62 = vector.load %arg7[%c0_43, %c0_44] : memref<8x1xf32, #tpu.memory_space<vmem>>, vector<8x1xf32>
    %63 = vector.broadcast %62 : vector<8x1xf32> to vector<8x288xf32>
    %64 = arith.addf %61, %63 : vector<8x288xf32>
    %cst_45 = arith.constant 0.000000e+00 : f32
    %65 = vector.broadcast %cst_45 : f32 to vector<8x288xf32>
    %66 = arith.cmpf oge, %64, %65 : vector<8x288xf32>
    %c0_46 = arith.constant 0 : index
    %c0_47 = arith.constant 0 : index
    %67 = vector.load %arg8[%c0_46, %c0_47] : memref<8x1xf32, #tpu.memory_space<vmem>>, vector<8x1xf32>
    %68 = vector.broadcast %67 : vector<8x1xf32> to vector<8x288xf32>
    %69 = arith.mulf %68, %64 : vector<8x288xf32>
    %70 = arith.select %66, %64, %69 : vector<8x288xi1>, vector<8x288xf32>
    %cst_48 = arith.constant 0.000000e+00 : f32
    %71 = vector.shape_cast %18 : vector<1x288xi1> to vector<1x288xi1>
    %72 = vector.broadcast %71 : vector<1x288xi1> to vector<8x288xi1>
    %73 = vector.broadcast %cst_48 : f32 to vector<8x288xf32>
    %74 = arith.select %72, %70, %73 : vector<8x288xi1>, vector<8x288xf32>
    %75 = arith.truncf %74 : vector<8x288xf32> to vector<8x288xbf16>
    %cst_49 = arith.constant 0.000000e+00 : bf16
    %76 = vector.broadcast %cst_49 : bf16 to vector<8x19xbf16>
    %c0_50 = arith.constant 0 : index
    %c0_51 = arith.constant 0 : index
    %77 = vector.load %arg14[%c0_50, %c0_51] : memref<8x384xbf16, #tpu.memory_space<vmem>>, vector<8x19xbf16>
    tpu.vector_store %arg14[%c0_50, %c0_51], %76 {strides = array<i32>} : memref<8x384xbf16, #tpu.memory_space<vmem>>, vector<8x19xbf16>,
    %c0_52 = arith.constant 0 : index
    %c19_53 = arith.constant 19 : index
    %78 = vector.load %arg14[%c0_52, %c19_53] : memref<8x384xbf16, #tpu.memory_space<vmem>>, vector<8x288xbf16>
    tpu.vector_store %arg14[%c0_52, %c19_53], %75 {strides = array<i32>} : memref<8x384xbf16, #tpu.memory_space<vmem>>, vector<8x288xbf16>,
    %cst_54 = arith.constant 0.000000e+00 : bf16
    %79 = vector.broadcast %cst_54 : bf16 to vector<8x77xbf16>
    %c0_55 = arith.constant 0 : index
    %c307_56 = arith.constant 307 : index
    %80 = vector.load %arg14[%c0_55, %c307_56] : memref<8x384xbf16, #tpu.memory_space<vmem>>, vector<8x77xbf16>
    tpu.vector_store %arg14[%c0_55, %c307_56], %79 {strides = array<i32>} : memref<8x384xbf16, #tpu.memory_space<vmem>>, vector<8x77xbf16>,
    %c0_57 = arith.constant 0 : index
    %c0_58 = arith.constant 0 : index
    %81 = vector.load %arg14[%c0_57, %c0_58] : memref<8x384xbf16, #tpu.memory_space<vmem>>, vector<8x288xbf16>
    %c0_59 = arith.constant 0 : index
    %c0_60 = arith.constant 0 : index
    %82 = vector.load %arg15[%c0_59, %c0_60] : memref<72x288xbf16, #tpu.memory_space<vmem>>, vector<8x288xbf16>
    tpu.vector_store %arg15[%c0_59, %c0_60], %81 {strides = array<i32>} : memref<72x288xbf16, #tpu.memory_space<vmem>>, vector<8x288xbf16>,
    %c0_61 = arith.constant 0 : index
    %c1_62 = arith.constant 1 : index
    %83 = vector.load %arg14[%c0_61, %c1_62] : memref<8x384xbf16, #tpu.memory_space<vmem>>, vector<8x288xbf16>
    %c8 = arith.constant 8 : index
    %c0_63 = arith.constant 0 : index
    %84 = vector.load %arg15[%c8, %c0_63] : memref<72x288xbf16, #tpu.memory_space<vmem>>, vector<8x288xbf16>
    tpu.vector_store %arg15[%c8, %c0_63], %83 {strides = array<i32>} : memref<72x288xbf16, #tpu.memory_space<vmem>>, vector<8x288xbf16>,
    %c0_64 = arith.constant 0 : index
    %c2_65 = arith.constant 2 : index
    %85 = vector.load %arg14[%c0_64, %c2_65] : memref<8x384xbf16, #tpu.memory_space<vmem>>, vector<8x288xbf16>
    %c16_66 = arith.constant 16 : index
    %c0_67 = arith.constant 0 : index
    %86 = vector.load %arg15[%c16_66, %c0_67] : memref<72x288xbf16, #tpu.memory_space<vmem>>, vector<8x288xbf16>
    tpu.vector_store %arg15[%c16_66, %c0_67], %85 {strides = array<i32>} : memref<72x288xbf16, #tpu.memory_space<vmem>>, vector<8x288xbf16>,
    %c0_68 = arith.constant 0 : index
    %c18_69 = arith.constant 18 : index
    %87 = vector.load %arg14[%c0_68, %c18_69] : memref<8x384xbf16, #tpu.memory_space<vmem>>, vector<8x288xbf16>
    %c24 = arith.constant 24 : index
    %c0_70 = arith.constant 0 : index
    %88 = vector.load %arg15[%c24, %c0_70] : memref<72x288xbf16, #tpu.memory_space<vmem>>, vector<8x288xbf16>
    tpu.vector_store %arg15[%c24, %c0_70], %87 {strides = array<i32>} : memref<72x288xbf16, #tpu.memory_space<vmem>>, vector<8x288xbf16>,
    %c0_71 = arith.constant 0 : index
    %c19_72 = arith.constant 19 : index
    %89 = vector.load %arg14[%c0_71, %c19_72] : memref<8x384xbf16, #tpu.memory_space<vmem>>, vector<8x288xbf16>
    %c32_73 = arith.constant 32 : index
    %c0_74 = arith.constant 0 : index
    %90 = vector.load %arg15[%c32_73, %c0_74] : memref<72x288xbf16, #tpu.memory_space<vmem>>, vector<8x288xbf16>
    tpu.vector_store %arg15[%c32_73, %c0_74], %89 {strides = array<i32>} : memref<72x288xbf16, #tpu.memory_space<vmem>>, vector<8x288xbf16>,
    %c0_75 = arith.constant 0 : index
    %c20_76 = arith.constant 20 : index
    %91 = vector.load %arg14[%c0_75, %c20_76] : memref<8x384xbf16, #tpu.memory_space<vmem>>, vector<8x288xbf16>
    %c40 = arith.constant 40 : index
    %c0_77 = arith.constant 0 : index
    %92 = vector.load %arg15[%c40, %c0_77] : memref<72x288xbf16, #tpu.memory_space<vmem>>, vector<8x288xbf16>
    tpu.vector_store %arg15[%c40, %c0_77], %91 {strides = array<i32>} : memref<72x288xbf16, #tpu.memory_space<vmem>>, vector<8x288xbf16>,
    %c0_78 = arith.constant 0 : index
    %c36_79 = arith.constant 36 : index
    %93 = vector.load %arg14[%c0_78, %c36_79] : memref<8x384xbf16, #tpu.memory_space<vmem>>, vector<8x288xbf16>
    %c48_80 = arith.constant 48 : index
    %c0_81 = arith.constant 0 : index
    %94 = vector.load %arg15[%c48_80, %c0_81] : memref<72x288xbf16, #tpu.memory_space<vmem>>, vector<8x288xbf16>
    tpu.vector_store %arg15[%c48_80, %c0_81], %93 {strides = array<i32>} : memref<72x288xbf16, #tpu.memory_space<vmem>>, vector<8x288xbf16>,
    %c0_82 = arith.constant 0 : index
    %c37_83 = arith.constant 37 : index
    %95 = vector.load %arg14[%c0_82, %c37_83] : memref<8x384xbf16, #tpu.memory_space<vmem>>, vector<8x288xbf16>
    %c56 = arith.constant 56 : index
    %c0_84 = arith.constant 0 : index
    %96 = vector.load %arg15[%c56, %c0_84] : memref<72x288xbf16, #tpu.memory_space<vmem>>, vector<8x288xbf16>
    tpu.vector_store %arg15[%c56, %c0_84], %95 {strides = array<i32>} : memref<72x288xbf16, #tpu.memory_space<vmem>>, vector<8x288xbf16>,
    %c0_85 = arith.constant 0 : index
    %c38_86 = arith.constant 38 : index
    %97 = vector.load %arg14[%c0_85, %c38_86] : memref<8x384xbf16, #tpu.memory_space<vmem>>, vector<8x288xbf16>
    %c64_87 = arith.constant 64 : index
    %c0_88 = arith.constant 0 : index
    %98 = vector.load %arg15[%c64_87, %c0_88] : memref<72x288xbf16, #tpu.memory_space<vmem>>, vector<8x288xbf16>
    tpu.vector_store %arg15[%c64_87, %c0_88], %97 {strides = array<i32>} : memref<72x288xbf16, #tpu.memory_space<vmem>>, vector<8x288xbf16>,
    %c0_89 = arith.constant 0 : index
    %c0_90 = arith.constant 0 : index
    %99 = vector.load %arg3[%c0_89, %c0_90] : memref<8x72xbf16, #tpu.memory_space<vmem>>, vector<8x72xbf16>
    %c0_91 = arith.constant 0 : index
    %c0_92 = arith.constant 0 : index
    %100 = vector.load %arg15[%c0_91, %c0_92] : memref<72x288xbf16, #tpu.memory_space<vmem>>, vector<72x288xbf16>
    %cst_93 = arith.constant dense<0.000000e+00> : vector<8x288xf32>
    %101 = tpu.matmul %99, %100, %cst_93 {dimension_numbers = #tpu.dot_dimension_numbers<[1], [0], [0], [1], [0, 0, 1, 1], [], []>} : vector<8x72xbf16>, vector<72x288xbf16>, vector<8x288xf32> -> vector<8x288xf32>
    %c0_94 = arith.constant 0 : index
    %c0_95 = arith.constant 0 : index
    %102 = vector.load %arg9[%c0_94, %c0_95] : memref<8x1xf32, #tpu.memory_space<vmem>>, vector<8x1xf32>
    %103 = vector.broadcast %102 : vector<8x1xf32> to vector<8x288xf32>
    %104 = arith.mulf %101, %103 : vector<8x288xf32>
    %c0_96 = arith.constant 0 : index
    %c0_97 = arith.constant 0 : index
    %105 = vector.load %arg10[%c0_96, %c0_97] : memref<8x1xf32, #tpu.memory_space<vmem>>, vector<8x1xf32>
    %106 = vector.broadcast %105 : vector<8x1xf32> to vector<8x288xf32>
    %107 = arith.addf %104, %106 : vector<8x288xf32>
    %c0_98 = arith.constant 0 : index
    %c0_99 = arith.constant 0 : index
    %c0_100 = arith.constant 0 : index
    %108 = vector.load %arg11[%c0_98, %c0_99, %c0_100] : memref<1x8x288xf32, #tpu.memory_space<vmem>>, vector<1x8x288xf32>
    %109 = vector.shape_cast %108 : vector<1x8x288xf32> to vector<8x288xf32>
    %110 = vector.shape_cast %107 : vector<8x288xf32> to vector<1x8x288xf32>
    tpu.vector_store %arg11[%c0_98, %c0_99, %c0_100], %110 {strides = array<i32>} : memref<1x8x288xf32, #tpu.memory_space<vmem>>, vector<1x8x288xf32>,
    return
  }
  func.func @transform_0(%arg0: i32) -> (i32, i32, i32) {
    %c0_i32 = arith.constant 0 : i32
    %c0_i32_0 = arith.constant 0 : i32
    %c0_i32_1 = arith.constant 0 : i32
    return %arg0, %c0_i32, %c0_i32_0 : i32, i32, i32
  }
  func.func @transform_1(%arg0: i32) -> (i32, i32) {
    %c0_i32 = arith.constant 0 : i32
    %c0_i32_0 = arith.constant 0 : i32
    %c0_i32_1 = arith.constant 0 : i32
    return %c0_i32, %c0_i32_0 : i32, i32
  }
  func.func @transform_2(%arg0: i32) -> (i32, i32) {
    %c0_i32 = arith.constant 0 : i32
    %c0_i32_0 = arith.constant 0 : i32
    %c0_i32_1 = arith.constant 0 : i32
    return %c0_i32, %c0_i32_0 : i32, i32
  }
  func.func @transform_3(%arg0: i32) -> (i32, i32) {
    %c0_i32 = arith.constant 0 : i32
    %c0_i32_0 = arith.constant 0 : i32
    %c0_i32_1 = arith.constant 0 : i32
    return %c0_i32, %c0_i32_0 : i32, i32
  }
  func.func @transform_4(%arg0: i32) -> (i32, i32) {
    %c0_i32 = arith.constant 0 : i32
    %c0_i32_0 = arith.constant 0 : i32
    %c0_i32_1 = arith.constant 0 : i32
    return %c0_i32, %c0_i32_0 : i32, i32
  }
  func.func @transform_5(%arg0: i32) -> (i32, i32) {
    %c0_i32 = arith.constant 0 : i32
    %c0_i32_0 = arith.constant 0 : i32
    %c0_i32_1 = arith.constant 0 : i32
    return %c0_i32, %c0_i32_0 : i32, i32
  }
  func.func @transform_6(%arg0: i32) -> (i32, i32) {
    %c0_i32 = arith.constant 0 : i32
    %c0_i32_0 = arith.constant 0 : i32
    %c0_i32_1 = arith.constant 0 : i32
    return %c0_i32, %c0_i32_0 : i32, i32
  }
  func.func @transform_7(%arg0: i32) -> (i32, i32) {
    %c0_i32 = arith.constant 0 : i32
    %c0_i32_0 = arith.constant 0 : i32
    %c0_i32_1 = arith.constant 0 : i32
    return %c0_i32, %c0_i32_0 : i32, i32
  }
  func.func @transform_8(%arg0: i32) -> (i32, i32) {
    %c0_i32 = arith.constant 0 : i32
    %c0_i32_0 = arith.constant 0 : i32
    %c0_i32_1 = arith.constant 0 : i32
    return %c0_i32, %c0_i32_0 : i32, i32
  }
  func.func @transform_9(%arg0: i32) -> (i32, i32) {
    %c0_i32 = arith.constant 0 : i32
    %c0_i32_0 = arith.constant 0 : i32
    %c0_i32_1 = arith.constant 0 : i32
    return %c0_i32, %c0_i32_0 : i32, i32
  }
  func.func @transform_10(%arg0: i32) -> (i32, i32, i32) {
    %c0_i32 = arith.constant 0 : i32
    %c0_i32_0 = arith.constant 0 : i32
    %c0_i32_1 = arith.constant 0 : i32
    return %arg0, %c0_i32, %c0_i32_0 : i32, i32, i32
  }
}

</mosaic_0001>

<bundles_post_ra>
// kernel: tpu_custom_call.1
= control target key start
LH: loop header
LB: loop body
LE: loop exit
PB: predicated region body
PF: predicated region fallthrough
CT: control target
= control target key end

     0   :  { %15 = vsyncpa [#allocation7], 0  ;;  %s2256_s0 = inlined_call_operand.vmem [shape: bf16[2,16,288], index: 0, kind: input, shape index: {}]   ;;  %s2257_s1 = inlined_call_operand.vmem [shape: bf16[8,144], index: 1, kind: input, shape index: {}]   ;;  %s2258_s2 = inlined_call_operand.vmem [shape: bf16[8,72], index: 2, kind: input, shape index: {}]   ;;  %s2259_s3 = inlined_call_operand.vmem [shape: f32[16,1], index: 3, kind: input, shape index: {}]   ;;  %s2260_s4 = inlined_call_operand.vmem [shape: f32[16,1], index: 4, kind: input, shape index: {}]   ;;  %s2261_s5 = inlined_call_operand.vmem [shape: f32[8,1], index: 5, kind: input, shape index: {}]   ;;  %s2262_s6 = inlined_call_operand.vmem [shape: f32[8,1], index: 6, kind: input, shape index: {}]   ;;  %s2263_s7 = inlined_call_operand.vmem [shape: f32[8,1], index: 7, kind: input, shape index: {}]   ;;  %s2264_s8 = inlined_call_operand.vmem [shape: f32[8,1], index: 8, kind: input, shape index: {}]   ;;  %s2265_s9 = inlined_call_operand.vmem [shape: f32[8,1], index: 9, kind: input, shape index: {}]   ;;  %s2266_s10 = inlined_call_operand.hbm [shape: f32[2,8,288], index: 10, kind: output, shape index: {}]  }
   0x1   :  { %17 = vsyncpa [#allocation7 + $0x1], 0  ;;  %s1838_s13 = smov 0   ;;  %s1840_s14 = smov 0  }
   0x2   :  { %s1842_s15 = smov 0   ;;  %s1844_s16 = smov 0  }
   0x3 LB: > { %s1859_s17 = sadd.s32 4294967295, %s1768_s16   ;;  %s1541_s18 = sadd.s32 4294967294, %s1768_s16   ;;  %s1768_s16 = sphi %s1844_s16, %s2306_s16   ;;  %s1764_s15 = sphi %s1842_s15, %s2305_s15   ;;  %s1760_s14 = sphi %s1840_s14, %s2304_s14   ;;  %s1756_s13 = sphi %s1838_s13, %s2303_s13  }
   0x4   : > { %s1863_s19 = sadd.s32 1, %s1768_s16   ;;  %s245_s20 = sadd.s32 1, %s1764_s15 }
   0x5   : > { %s242_s21 = ssub.s32 %s1768_s16, %s1863_s19  ;;  %p255_p0 = scmp.ne.s32.totalorder %s1764_s15, %s1760_s14 }
   0x6   : > { %p243_p1 = scmp.eq.s32.totalorder %s242_s21, 0  ;;  %p256_p2 = scmp.eq.s32.totalorder %s1859_s17, 1 }
   0x7   : > { %p261_p3 = scmp.ne.s32.totalorder %s1760_s14, %s1756_s13  ;;  %p262_p4 = scmp.eq.s32.totalorder %s1541_s18, 1 }
   0x8   : > { %s1874_s22 = scalar_select %p243_p1, %s1764_s15, %s245_s20  }
   0x9   : > { %p1876_p5 = por %p256_p2, %p255_p0  ;;  %p1880_p6 = por %p262_p4, %p261_p3 }
   0xa   : > { %p1544_p7 = scmp.ge.s32.totalorder %s1768_s16, 1  ;;  %p315_p8 = scmp.lt.s32.totalorder %s1768_s16, 3 }
   0xc   : > { %p316_p9 = pnand %p1544_p7, %p315_p8 }
   0xd   : > { %p353_p10 = scmp.lt.s32.totalorder (!%p316_p9), %s1859_s17, 1  ;;  %s1771_s27 = smov (!%p316_p9), 19  }
   0xe   : > { %319 = sbr.rel (%p316_p9) target bundleno = 1167 (0x48f), region = 60  ;;  %s1772_s28 = smov (!%p316_p9), 91  }
   0xf   : > { %s1773_s29 = smov (!%p316_p9), 92   ;;  %s2273_s30 = smov (!%p316_p9), 108  }
  0x10   : > { %s1775_s11 = smov (!%p316_p9), 109   ;;  %s2269_s12 = smov (!%p316_p9), 110  }
  0x11   : > { %s1779_s21 = smov (!%p316_p9), 90  }
  0x13   : > { %v442_v0 = vld [vmem:[%s2260_s4] sm:$0xff]  ;;  %v1770_v2 = vmov 0   ;;  %v443_v3 = vld [vmem:[%s2260_s4 + $0x8] sm:$0xff]  ;;  %vm475_vm0 = vcmask 150528   ;;  %v359_v5 = vlaneseq  ;;  %s354_s18 = scalar_select %p353_p10, %s1859_s17, 1  ;;  %vm510_vm13 = vcmask 1043608  }
  0x14   : > { %v424_v1 = vld [vmem:[%s2259_s3] sm:$0xff]  ;;  %1691 = vset.pattern.permute.xlu1 %v1770_v2  ;;  %1690 = vset.pattern.permute.xlu0 %v1770_v2  ;;  %v425_v4 = vld [vmem:[%s2259_s3 + $0x8] sm:$0xff]  ;;  %476 = vst.msk [vmem:[#allocation2] sm:$0xf] %vm475_vm0, %v1770_v2  ;;  %477 = vst.msk [vmem:[#allocation2 + $0xc] sm:$0xf] %vm475_vm0, %v1770_v2 }
  0x15   : > { %446 = vperm.xlu1 %1691, %v442_v0   ;;  %428 = vperm.xlu0 %1690, %v424_v1   ;;  %1106 = vst.msk [vmem:[#allocation4] sm:$0xf] %vm475_vm0, %v1770_v2  ;;  %v360_v6 = vand.u32 127, %v359_v5  ;;  %s1631_s20 = smul.u32 24, %s354_s18  ;;  %vm511_vm14 = vcmask 1047556   ;;  %vm501_vm15 = vcmask 154624  }
  0x16   : > { %1027 = vmatprep.subr.bf16.mxu1 %v1770_v2  ;;  %vm1967_vm0 = vmor %vm511_vm14, %vm510_vm13  ;;  %s2271_s18 = smov 126   ;;  %vm2275_vm13 = vcmask 900096   ;;  %vm2277_vm14 = vcmask 1031168   ;;  %v1780_v47 = vmov 0.0  }
  0x17   : > { %v361_v7 = vadd.s32 128, %v360_v6  ;;  %v362_v8 = vadd.s32 256, %v360_v6  ;;  %v1904_v9 = vmul.u32.u64.low 3817748708, %v360_v6  ;;  %v1905_v10 = vmul.u32.u64.high 3817748708, %v360_v6, %v1904_v9  ;;  %s357_s26 = scalar_lea.vmem %s2256_s0, %s1631_s20  ;;  %s2267_s20 = smov 127  }
  0x18   : > { %v414_v24 = vld [vmem:[%s357_s26] sm:$0xff]  ;;  %v415_v25 = vld [vmem:[%s357_s26 + $0x8] ss:$12 sps:$4 sm:$0xff]   ;;  %v416_v32 = vld [vmem:[%s357_s26 + $0xc] sm:$0xff]  ;;  %s350_s26 = sand.u32 1, %s1760_s14  }
  0x19   : > { %451 = vperm.xlu1 %1691, %v443_v3   ;;  %433 = vperm.xlu0 %1690, %v425_v4   ;;  %v1907_v11 = vmul.u32.u64.low 3817748708, %v361_v7  ;;  %v1908_v12 = vmul.u32.u64.high 3817748708, %v361_v7, %v1907_v11  ;;  %v1910_v13 = vmul.u32.u64.low 3817748708, %v362_v8  ;;  %v1911_v14 = vmul.u32.u64.high 3817748708, %v362_v8, %v1910_v13 }
  0x1a   : > { %v369_v15 = vshrl.u32 %v1905_v10, 4  ;;  %v418_v29 = vunpack.c.l.bf16 %v414_v24  ;;  %v419_v30 = vunpack.c.h.bf16 %v414_v24  ;;  %v420_v31 = vunpack.c.l.bf16 %v415_v25 }
  0x1b   : > { %v380_v16 = vshrl.u32 %v1908_v12, 4  ;;  %v391_v17 = vshrl.u32 %v1911_v14, 4  ;;  %v421_v39 = vunpack.c.l.bf16 %v416_v32  ;;  %v422_v40 = vunpack.c.h.bf16 %v416_v32 }
  0x1c   : > { %v370_v18 = vmul.u32 18, %v369_v15  ;;  %v423_v41 = vunpack.c.h.bf16 %v415_v25 }
  0x1d   : > { %v381_v19 = vmul.u32 18, %v380_v16  ;;  %v392_v20 = vmul.u32 18, %v391_v17 }
  0x1e   : > { %v371_v21 = vsub.s32 %v360_v6, %v370_v18 }
  0x1f   : > { %v382_v22 = vsub.s32 %v361_v7, %v381_v19  ;;  %v393_v23 = vsub.s32 %v362_v8, %v392_v20 }
  0x20   : > { %vm396_vm1 = vcmp.ne.s32.totalorder %v371_v21, 0  ;;  %vm399_vm2 = vcmp.lt.s32.totalorder %v371_v21, 0  ;;  %v405_v26 = vadd.s32 18, %v371_v21 }
  0x21   : > { %vm397_vm3 = vcmp.ne.s32.totalorder %v382_v22, 0  ;;  %vm400_vm4 = vcmp.lt.s32.totalorder %v382_v22, 0  ;;  %vm398_vm5 = vcmp.ne.s32.totalorder %v393_v23, 0  ;;  %vm401_vm6 = vcmp.lt.s32.totalorder %v393_v23, 0  ;;  %vm1921_vm7 = vmand %vm399_vm2, %vm396_vm1 }
  0x22   : > { %v406_v28 = vadd.s32 18, %v382_v22  ;;  %vm1925_vm8 = vmand %vm400_vm4, %vm397_vm3  ;;  %v407_v34 = vadd.s32 18, %v393_v23  ;;  %v408_v36 = vsel %vm1921_vm7, %v405_v26, %v371_v21  ;;  %vm514_vm1 = vcmask 412672  }
  0x23   : > { %vm1929_vm9 = vmand %vm401_vm6, %vm398_vm5  ;;  %vm1939_vm10 = vcmp.lt.s32.totalorder %v408_v36, 16  ;;  %vm518_vm2 = vcmask 1043864   ;;  %vm526_vm3 = vcmask 257024   ;;  %vm982_vm4 = vcmask 130048  }
  0x24   : > { %v409_v42 = vsel %vm1925_vm8, %v406_v28, %v382_v22  ;;  %v410_v46 = vsel %vm1929_vm9, %v407_v34, %v393_v23  ;;  %vm550_vm5 = vcmask 1043456   ;;  %vm750_vm6 = vcmask 744448  }
  0x25   : > { %vm1943_vm11 = vcmp.lt.s32.totalorder %v409_v42, 16  ;;  %vm1947_vm12 = vcmp.lt.s32.totalorder %v410_v46, 16  ;;  %vm717_vm7 = vcmask 752640   ;;  %vm2278_vm8 = vcmask 883712  }
  0x26   : > { %vm651_vm9 = vcmask 891904  }
  0x90   : > { %v447_v37 = vpop.permute.xlu1 %446  ;;  %v429_v38 = vpop.permute.xlu0 %428 }
  0x91   : > { %v436_v43 = vmul.f32 %v429_v38, %v418_v29  ;;  %v437_v44 = vmul.f32 %v429_v38, %v419_v30  ;;  %v438_v45 = vmul.f32 %v429_v38, %v420_v31 }
  0x93   : > { %v454_v48 = vadd.f32 %v447_v37, %v436_v43  ;;  %v455_v49 = vadd.f32 %v447_v37, %v437_v44  ;;  %v456_v51 = vadd.f32 %v447_v37, %v438_v45  ;;  %v1067_v43 = vld [vmem:[%s2261_s5] sm:$0xff] }
  0x94   : > { %v434_v52 = vpop.permute.xlu0 %433  ;;  %v452_v58 = vpop.permute.xlu1 %451  ;;  %v1076_v44 = vld [vmem:[%s2262_s6] sm:$0xff] }
  0x95   : > { %v439_v54 = vmul.f32 %v434_v52, %v421_v39  ;;  %v440_v55 = vmul.f32 %v434_v52, %v422_v40  ;;  %v441_v56 = vmul.f32 %v434_v52, %v423_v41  ;;  %v466_v57 = vsel %vm1939_vm10, %v454_v48, 0.0  ;;  %v2042_v40 = vld [vmem:[%s2257_s1] sm:$0xff] }
  0x96   : > { %v467_v59 = vsel %vm1943_vm11, %v455_v49, 0.0  ;;  %v468_v0 = vsel %vm1947_vm12, %v456_v51, 0.0  ;;  %v1551_v41 = vcombine.high %v2042_v40, %v2042_v40  ;;  %v1088_v45 = vld [vmem:[%s2263_s7] sm:$0xff] }
  0x97   : > { %v457_v60 = vadd.f32 %v452_v58, %v439_v54  ;;  %v458_v61 = vadd.f32 %v452_v58, %v440_v55  ;;  %v459_v62 = vadd.f32 %v452_v58, %v441_v56  ;;  %v1604_v63 = vpack.c.bf16 %v467_v59, %v466_v57 }
  0x98   : > { %v1605_v5 = vpack.c.bf16 %v468_v0, %v468_v0  ;;  %1580 = vmatprep.mubr.msk.bf16.mxu1 %vm982_vm4, %v1551_v41  ;;  %1579 = vmatprep.mubr.msk.bf16.mxu0 %vm982_vm4, %v1551_v41  ;;  %vm2276_vm4 = vcmask 1039360  }
  0x99   : > { %491 = vrot.lane.b32.xlu0 %v1604_v63, %s1771_s27  ;;  %v469_v1 = vsel %vm1939_vm10, %v457_v60, 0.0  ;;  %v470_v3 = vsel %vm1943_vm11, %v458_v61, 0.0  ;;  %v471_v6 = vsel %vm1947_vm12, %v459_v62, 0.0 }
  0x9a   : > { %v1606_v4 = vpack.c.bf16 %v470_v3, %v469_v1  ;;  %v1607_v7 = vpack.c.bf16 %v471_v6, %v471_v6 }
  0x9c   : > { %495 = vrot.lane.b32.xlu1 %v1606_v4, %s1771_s27 }
  0x9d   : > { %493 = vrot.lane.b32.xlu0 %v1605_v5, %s1771_s27 }
  0xa0   : > { %497 = vrot.lane.b32.xlu1 %v1607_v7, %s1771_s27 }
 0x10b   : > { %v492_v8 = vpop.permute.xlu0 %491 }
 0x10c   : > { %v499_v10 = vrot.slane %v492_v8, 4 }
 0x10e   : > { %v502_v11 = vsel %vm501_vm15, %v499_v10, %v492_v8  ;;  %v496_v12 = vpop.permute.xlu1 %495 }
 0x10f   : > { %513 = vst.msk [vmem:[#allocation2] sm:$0xff] %vm1967_vm0, %v502_v11  ;;  %v500_v13 = vrot.slane %v496_v12, 4  ;;  %v494_v14 = vpop.permute.xlu0 %493 }
 0x110   : > { %v503_v15 = vsel %vm501_vm15, %v499_v10, %v494_v14 }
 0x111   : > { %v504_v16 = vsel %vm501_vm15, %v500_v13, %v496_v12  ;;  %515 = vst.msk [vmem:[#allocation2 + $0x8] sm:$0xf] %vm514_vm1, %v503_v15 }
 0x112   : > { %516 = vst.msk [vmem:[#allocation2 + $0xc] sm:$0xff] %vm1967_vm0, %v504_v16  ;;  %v498_v17 = vpop.permute.xlu1 %497 }
 0x113   : > { %519 = vst.msk [vmem:[#allocation2 + $0x8] sm:$0xf] %vm518_vm2, %v1770_v2  ;;  %v505_v18 = vsel %vm501_vm15, %v500_v13, %v498_v17 }
 0x114   : > { %517 = vst.msk [vmem:[#allocation2 + $0x14] sm:$0xf] %vm514_vm1, %v505_v18 }
 0x115   : > { %520 = vst.msk [vmem:[#allocation2 + $0x14] sm:$0xf] %vm518_vm2, %v1770_v2 }
 0x116   : > { %v1985_v19 = vld [vmem:[#allocation2] sm:$0xff] }
 0x117   : > { %737 = vrot.lane.b32.xlu0 %v1985_v19, %s1772_s28 }
 0x119   : > { %v1989_v20 = vld [vmem:[#allocation2 + $0xc] sm:$0xff] }
 0x11a   : > { %v522_v21 = vld [vmem:[#allocation2 + $0x8] sm:$0xf]  ;;  %v1553_v23 = vcombine.high %v1985_v19, %v1989_v20  ;;  %v1552_v24 = vcombine.low %v1985_v19, %v1989_v20 }
 0x11b   : > { %v730_v22 = vld [vmem:[#allocation2 + $0x8] sm:$0xf]  ;;  %527 = vst.msk [vmem:[#allocation3 + $0x8] sm:$0xf] %vm526_vm3, %v522_v21  ;;  %741 = vrot.lane.b32.xlu0 %v1989_v20, %s1772_s28 }
 0x11c   : > { %739 = vrot.lane.b32.xlu1 %v730_v22, %s1772_s28  ;;  %v524_v25 = vld [vmem:[#allocation2 + $0x14] sm:$0xf]  ;;  %v697_v27 = vld [vmem:[#allocation2 + $0x8] sm:$0xf] }
 0x11d   : > { %v732_v26 = vld [vmem:[#allocation2 + $0x14] sm:$0xf]  ;;  %529 = vst.msk [vmem:[#allocation3 + $0x14] sm:$0xf] %vm526_vm3, %v524_v25  ;;  %v664_v29 = vld [vmem:[#allocation2 + $0x8] sm:$0xf] }
 0x11e   : > { %v699_v28 = vld [vmem:[#allocation2 + $0x14] sm:$0xf]  ;;  %v631_v31 = vld [vmem:[#allocation2 + $0x8] sm:$0xf] }
 0x11f   : > { %704 = vrot.lane.b32.xlu0 %v1985_v19, %s1773_s29  ;;  %v666_v30 = vld [vmem:[#allocation2 + $0x14] sm:$0xf]  ;;  %v598_v33 = vld [vmem:[#allocation2 + $0x8] sm:$0xf] }
 0x120   : > { %743 = vrot.lane.b32.xlu1 %v732_v26, %s1772_s28  ;;  %v633_v32 = vld [vmem:[#allocation2 + $0x14] sm:$0xf]  ;;  %v565_v35 = vld [vmem:[#allocation2 + $0x8] sm:$0xf] }
 0x121   : > { %v600_v34 = vld [vmem:[#allocation2 + $0x14] sm:$0xf]  ;;  %v531_v37 = vld [vmem:[#allocation2 + $0x8] sm:$0xf] }
 0x122   : > { %v567_v36 = vld [vmem:[#allocation2 + $0x14] sm:$0xf]  ;;  %v763_v39 = vld [vmem:[#allocation2 + $0x8] sm:$0xf] }
 0x123   : > { %708 = vrot.lane.b32.xlu0 %v1989_v20, %s1773_s29  ;;  %v533_v38 = vld [vmem:[#allocation2 + $0x14] sm:$0xf] }
 0x124   : > { %706 = vrot.lane.b32.xlu1 %v697_v27, %s1773_s29  ;;  %v765_v42 = vld [vmem:[#allocation2 + $0x14] sm:$0xf] }
 0x127   : > { %671 = vrot.lane.b32.xlu0 %v1985_v19, %s2273_s30 }
 0x128   : > { %710 = vrot.lane.b32.xlu1 %v699_v28, %s1773_s29 }
 0x12b   : > { %675 = vrot.lane.b32.xlu0 %v1989_v20, %s2273_s30 }
 0x12c   : > { %673 = vrot.lane.b32.xlu1 %v664_v29, %s2273_s30 }
 0x12f   : > { %638 = vrot.lane.b32.xlu0 %v1985_v19, %s1775_s11 }
 0x130   : > { %677 = vrot.lane.b32.xlu1 %v666_v30, %s2273_s30  ;;  %s2298_s30 = smov 127  }
 0x133   : > { %642 = vrot.lane.b32.xlu0 %v1989_v20, %s1775_s11 }
 0x134   : > { %640 = vrot.lane.b32.xlu1 %v631_v31, %s1775_s11 }
 0x137   : > { %605 = vrot.lane.b32.xlu0 %v1985_v19, %s2269_s12 }
 0x138   : > { %644 = vrot.lane.b32.xlu1 %v633_v32, %s1775_s11 }
 0x13b   : > { %609 = vrot.lane.b32.xlu0 %v1989_v20, %s2269_s12 }
 0x13c   : > { %607 = vrot.lane.b32.xlu1 %v598_v33, %s2269_s12 }
 0x13f   : > { %572 = vrot.lane.b32.xlu0 %v1985_v19, %s2271_s18 }
 0x140   : > { %611 = vrot.lane.b32.xlu1 %v600_v34, %s2269_s12 }
 0x143   : > { %576 = vrot.lane.b32.xlu0 %v1989_v20, %s2271_s18 }
 0x144   : > { %574 = vrot.lane.b32.xlu1 %v565_v35, %s2271_s18 }
 0x147   : > { %538 = vrot.lane.b32.xlu0 %v1985_v19, %s2267_s20 }
 0x148   : > { %578 = vrot.lane.b32.xlu1 %v567_v36, %s2271_s18 }
 0x14b   : > { %542 = vrot.lane.b32.xlu0 %v1989_v20, %s2267_s20 }
 0x14c   : > { %540 = vrot.lane.b32.xlu1 %v531_v37, %s2267_s20 }
 0x14f   : > { %770 = vrot.lane.b32.xlu0 %v1985_v19, %s1779_s21 }
 0x150   : > { %544 = vrot.lane.b32.xlu1 %v533_v38, %s2267_s20 }
 0x153   : > { %774 = vrot.lane.b32.xlu0 %v1989_v20, %s1779_s21 }
 0x154   : > { %772 = vrot.lane.b32.xlu1 %v763_v39, %s1779_s21 }
 0x157   : > { %1070 = vperm.xlu0 %1690, %v1067_v43  }
 0x158   : > { %776 = vrot.lane.b32.xlu1 %v765_v42, %s1779_s21 }
 0x15b   : > { %1091 = vperm.xlu0 %1690, %v1088_v45  }
 0x15c   : > { %1079 = vperm.xlu1 %1691, %v1076_v44  }
 0x189   : > { %v738_v46 = vpop.permute.xlu0 %737 }
 0x18a   : > { %v745_v49 = vrot.slane %v738_v46, 4 }
 0x18d   : > { %v742_v52 = vpop.permute.xlu0 %741 }
 0x18e   : > { %v740_v48 = vpop.permute.xlu1 %739  ;;  %v747_v57 = vrot.slane %v742_v52, 4 }
 0x18f   : > { %v746_v51 = vrot.slane %v740_v48, 4  ;;  %759 = vst.msk [vmem:[#allocation3 + $0xb0] sm:$0xf] %vm526_vm3, %v740_v48 }
 0x191   : > { %v749_v54 = vsel %vm550_vm5, %v745_v49, %v746_v51  ;;  %v705_v59 = vpop.permute.xlu0 %704 }
 0x192   : > { %v751_v55 = vsel %vm750_vm6, %v738_v46, %v749_v54  ;;  %v744_v56 = vpop.permute.xlu1 %743  ;;  %v712_v63 = vrot.slane %v705_v59, 4 }
 0x193   : > { %v748_v58 = vrot.slane %v744_v56, 4  ;;  %761 = vst.msk [vmem:[#allocation3 + $0xbc] sm:$0xf] %vm526_vm3, %v744_v56 }
 0x195   : > { %v752_v60 = vsel %vm550_vm5, %v747_v57, %v748_v58  ;;  %v709_v1 = vpop.permute.xlu0 %708 }
 0x196   : > { %v753_v61 = vsel %vm750_vm6, %v742_v52, %v752_v60  ;;  %v707_v62 = vpop.permute.xlu1 %706  ;;  %v714_v10 = vrot.slane %v709_v1, 4 }
 0x197   : > { %v713_v0 = vrot.slane %v707_v62, 4  ;;  %726 = vst.msk [vmem:[#allocation3 + $0x98] sm:$0xf] %vm526_vm3, %v707_v62  ;;  %v1574_v3 = vcombine.high %v751_v55, %v753_v61  ;;  %v1573_v4 = vcombine.low %v751_v55, %v753_v61 }
 0x199   : > { %v716_v5 = vsel %vm550_vm5, %v712_v63, %v713_v0  ;;  %986 = vmatprep.subr.bf16.mxu0 %v1574_v3  ;;  %v672_v12 = vpop.permute.xlu0 %671 }
 0x19a   : > { %v718_v6 = vsel %vm717_vm7, %v705_v59, %v716_v5  ;;  %v711_v7 = vpop.permute.xlu1 %710  ;;  %v1692_v8 = vld [vmem:[#allocation3 + $0xb0] ss:$12 sps:$4 sm:$0xff]   ;;  %987 = vmatpush1.bf16.msra.mxu0 %v1573_v4  ;;  %v679_v16 = vrot.slane %v672_v12, 4 }
 0x19b   : > { %v715_v11 = vrot.slane %v711_v7, 4  ;;  %728 = vst.msk [vmem:[#allocation3 + $0xa4] sm:$0xf] %vm526_vm3, %v711_v7  ;;  %1028 = vmatpush1.bf16.msra.mxu1 %v1692_v8 }
 0x19c   : > { %1029 = vmatprep.subr.bf16.mxu1 %v1770_v2 }
 0x19d   : > { %v719_v13 = vsel %vm550_vm5, %v714_v10, %v715_v11  ;;  %v676_v18 = vpop.permute.xlu0 %675 }
 0x19e   : > { %v720_v14 = vsel %vm717_vm7, %v709_v1, %v719_v13  ;;  %v674_v15 = vpop.permute.xlu1 %673  ;;  %v681_v29 = vrot.slane %v676_v18, 4 }
 0x19f   : > { %v680_v17 = vrot.slane %v674_v15, 4  ;;  %693 = vst.msk [vmem:[#allocation3 + $0x80] sm:$0xf] %vm526_vm3, %v674_v15  ;;  %v1571_v21 = vcombine.high %v718_v6, %v720_v14  ;;  %v1570_v22 = vcombine.low %v718_v6, %v720_v14 }
 0x1a1   : > { %v683_v25 = vsel %vm550_vm5, %v679_v16, %v680_v17  ;;  %988 = vmatprep.subr.bf16.mxu0 %v1571_v21  ;;  %v639_v31 = vpop.permute.xlu0 %638 }
 0x1a2   : > { %v685_v26 = vsel %vm2278_vm8, %v672_v12, %v683_v25  ;;  %v678_v27 = vpop.permute.xlu1 %677  ;;  %v1693_v28 = vld [vmem:[#allocation3 + $0x98] ss:$12 sps:$4 sm:$0xff]   ;;  %989 = vmatpush1.bf16.msra.mxu0 %v1570_v22  ;;  %v646_v35 = vrot.slane %v639_v31, 4 }
 0x1a3   : > { %v682_v30 = vrot.slane %v678_v27, 4  ;;  %695 = vst.msk [vmem:[#allocation3 + $0x8c] sm:$0xf] %vm526_vm3, %v678_v27  ;;  %1030 = vmatpush1.bf16.msra.mxu1 %v1693_v28 }
 0x1a4   : > { %1031 = vmatprep.subr.bf16.mxu1 %v1770_v2 }
 0x1a5   : > { %v686_v32 = vsel %vm550_vm5, %v681_v29, %v682_v30  ;;  %v643_v37 = vpop.permute.xlu0 %642 }
 0x1a6   : > { %v687_v33 = vsel %vm2278_vm8, %v676_v18, %v686_v32  ;;  %v641_v34 = vpop.permute.xlu1 %640  ;;  %v648_v45 = vrot.slane %v643_v37, 4 }
 0x1a7   : > { %v647_v36 = vrot.slane %v641_v34, 4  ;;  %660 = vst.msk [vmem:[#allocation3 + $0x68] sm:$0xf] %vm526_vm3, %v641_v34  ;;  %v1568_v38 = vcombine.high %v685_v26, %v687_v33  ;;  %v1567_v39 = vcombine.low %v685_v26, %v687_v33 }
 0x1a9   : > { %v650_v41 = vsel %vm550_vm5, %v646_v35, %v647_v36  ;;  %990 = vmatprep.subr.bf16.mxu0 %v1568_v38  ;;  %v606_v48 = vpop.permute.xlu0 %605 }
 0x1aa   : > { %v652_v42 = vsel %vm651_vm9, %v639_v31, %v650_v41  ;;  %v645_v43 = vpop.permute.xlu1 %644  ;;  %v1694_v44 = vld [vmem:[#allocation3 + $0x80] ss:$12 sps:$4 sm:$0xff]   ;;  %991 = vmatpush1.bf16.msra.mxu0 %v1567_v39  ;;  %v613_v54 = vrot.slane %v606_v48, 4 }
 0x1ab   : > { %v649_v46 = vrot.slane %v645_v43, 4  ;;  %662 = vst.msk [vmem:[#allocation3 + $0x74] sm:$0xf] %vm526_vm3, %v645_v43  ;;  %1032 = vmatpush1.bf16.msra.mxu1 %v1694_v44 }
 0x1ac   : > { %1033 = vmatprep.subr.bf16.mxu1 %v1770_v2 }
 0x1ad   : > { %v653_v49 = vsel %vm550_vm5, %v648_v45, %v649_v46  ;;  %v610_v56 = vpop.permute.xlu0 %609 }
 0x1ae   : > { %v654_v51 = vsel %vm651_vm9, %v643_v37, %v653_v49  ;;  %v608_v52 = vpop.permute.xlu1 %607  ;;  %v615_v63 = vrot.slane %v610_v56, 4 }
 0x1af   : > { %v614_v55 = vrot.slane %v608_v52, 4  ;;  %627 = vst.msk [vmem:[#allocation3 + $0x50] sm:$0xf] %vm526_vm3, %v608_v52  ;;  %v1565_v57 = vcombine.high %v652_v42, %v654_v51  ;;  %v1564_v58 = vcombine.low %v652_v42, %v654_v51 }
 0x1b1   : > { %v617_v59 = vsel %vm550_vm5, %v613_v54, %v614_v55  ;;  %992 = vmatprep.subr.bf16.mxu0 %v1565_v57  ;;  %v573_v1 = vpop.permute.xlu0 %572 }
 0x1b2   : > { %v619_v60 = vsel %vm2275_vm13, %v606_v48, %v617_v59  ;;  %v612_v61 = vpop.permute.xlu1 %611  ;;  %v1695_v62 = vld [vmem:[#allocation3 + $0x68] ss:$12 sps:$4 sm:$0xff]   ;;  %993 = vmatpush1.bf16.msra.mxu0 %v1564_v58  ;;  %v580_v6 = vrot.slane %v573_v1, 4 }
 0x1b3   : > { %v616_v0 = vrot.slane %v612_v61, 4  ;;  %629 = vst.msk [vmem:[#allocation3 + $0x5c] sm:$0xf] %vm526_vm3, %v612_v61  ;;  %1034 = vmatpush1.bf16.msra.mxu1 %v1695_v62 }
 0x1b4   : > { %1035 = vmatprep.subr.bf16.mxu1 %v1770_v2 }
 0x1b5   : > { %v620_v3 = vsel %vm550_vm5, %v615_v63, %v616_v0  ;;  %v577_v8 = vpop.permute.xlu0 %576 }
 0x1b6   : > { %v621_v4 = vsel %vm2275_vm13, %v610_v56, %v620_v3  ;;  %v575_v5 = vpop.permute.xlu1 %574  ;;  %v582_v16 = vrot.slane %v577_v8, 4  ;;  %vm783_vm13 = vcmask 736256   ;;  %v1699_v56 = vld [vmem:[#allocation3 + $0x8] ss:$12 sps:$4 sm:$0xff]  }
 0x1b7   : > { %v581_v7 = vrot.slane %v575_v5, 4  ;;  %594 = vst.msk [vmem:[#allocation3 + $0x38] sm:$0xf] %vm526_vm3, %v575_v5  ;;  %v1562_v10 = vcombine.high %v619_v60, %v621_v4  ;;  %v1561_v11 = vcombine.low %v619_v60, %v621_v4 }
 0x1b9   : > { %v584_v12 = vsel %vm550_vm5, %v580_v6, %v581_v7  ;;  %994 = vmatprep.subr.bf16.mxu0 %v1562_v10  ;;  %v539_v18 = vpop.permute.xlu0 %538 }
 0x1ba   : > { %v586_v13 = vsel %vm2277_vm14, %v573_v1, %v584_v12  ;;  %v579_v14 = vpop.permute.xlu1 %578  ;;  %v1696_v15 = vld [vmem:[#allocation3 + $0x50] ss:$12 sps:$4 sm:$0xff]   ;;  %995 = vmatpush1.bf16.msra.mxu0 %v1561_v11  ;;  %v546_v26 = vrot.slane %v539_v18, 4 }
 0x1bb   : > { %v583_v17 = vrot.slane %v579_v14, 4  ;;  %596 = vst.msk [vmem:[#allocation3 + $0x44] sm:$0xf] %vm526_vm3, %v579_v14  ;;  %1036 = vmatpush1.bf16.msra.mxu1 %v1696_v15 }
 0x1bc   : > { %1037 = vmatprep.subr.bf16.mxu1 %v1770_v2 }
 0x1bd   : > { %v587_v21 = vsel %vm550_vm5, %v582_v16, %v583_v17  ;;  %v543_v28 = vpop.permute.xlu0 %542 }
 0x1be   : > { %v588_v22 = vsel %vm2277_vm14, %v577_v8, %v587_v21  ;;  %v541_v25 = vpop.permute.xlu1 %540  ;;  %v548_v35 = vrot.slane %v543_v28, 4 }
 0x1bf   : > { %v547_v27 = vrot.slane %v541_v25, 4  ;;  %561 = vst.msk [vmem:[#allocation3 + $0x20] sm:$0xf] %vm526_vm3, %v541_v25  ;;  %v1559_v29 = vcombine.high %v586_v13, %v588_v22  ;;  %v1558_v30 = vcombine.low %v586_v13, %v588_v22 }
 0x1c1   : > { %v551_v31 = vsel %vm550_vm5, %v546_v26, %v547_v27  ;;  %996 = vmatprep.subr.bf16.mxu0 %v1559_v29  ;;  %v771_v37 = vpop.permute.xlu0 %770 }
 0x1c2   : > { %v553_v32 = vsel %vm2276_vm4, %v539_v18, %v551_v31  ;;  %v545_v33 = vpop.permute.xlu1 %544  ;;  %v1697_v34 = vld [vmem:[#allocation3 + $0x38] ss:$12 sps:$4 sm:$0xff]   ;;  %997 = vmatpush1.bf16.msra.mxu0 %v1558_v30  ;;  %v778_v42 = vrot.slane %v771_v37, 4 }
 0x1c3   : > { %v549_v36 = vrot.slane %v545_v33, 4  ;;  %563 = vst.msk [vmem:[#allocation3 + $0x2c] sm:$0xf] %vm526_vm3, %v545_v33  ;;  %1038 = vmatpush1.bf16.msra.mxu1 %v1697_v34 }
 0x1c4   : > { %1039 = vmatprep.subr.bf16.mxu1 %v1770_v2 }
 0x1c5   : > { %v554_v38 = vsel %vm550_vm5, %v548_v35, %v549_v36  ;;  %v775_v46 = vpop.permute.xlu0 %774 }
 0x1c6   : > { %v555_v39 = vsel %vm2276_vm4, %v543_v28, %v554_v38  ;;  %v773_v41 = vpop.permute.xlu1 %772  ;;  %v780_v54 = vrot.slane %v775_v46, 4 }
 0x1c7   : > { %v779_v43 = vrot.slane %v773_v41, 4  ;;  %792 = vst.msk [vmem:[#allocation3 + $0xc8] sm:$0xf] %vm526_vm3, %v773_v41  ;;  %v1556_v44 = vcombine.high %v553_v32, %v555_v39  ;;  %v1555_v45 = vcombine.low %v553_v32, %v555_v39  ;;  %v1445_v39 = vld [vmem:[%s2264_s8] sm:$0xff] }
 0x1c8   : > { %v1454_v41 = vld [vmem:[%s2265_s9] sm:$0xff] }
 0x1c9   : > { %v782_v48 = vsel %vm550_vm5, %v778_v42, %v779_v43  ;;  %998 = vmatprep.subr.bf16.mxu0 %v1556_v44 }
 0x1ca   : > { %v784_v49 = vsel %vm783_vm13, %v771_v37, %v782_v48  ;;  %v777_v51 = vpop.permute.xlu1 %776  ;;  %v1698_v52 = vld [vmem:[#allocation3 + $0x20] ss:$12 sps:$4 sm:$0xff]   ;;  %999 = vmatpush1.bf16.msra.mxu0 %v1555_v45 }
 0x1cb   : > { %v781_v55 = vrot.slane %v777_v51, 4  ;;  %794 = vst.msk [vmem:[#allocation3 + $0xd4] sm:$0xf] %vm526_vm3, %v777_v51  ;;  %1000 = vmatprep.subr.bf16.mxu0 %v1553_v23  ;;  %1040 = vmatpush1.bf16.msra.mxu1 %v1698_v52  ;;  %v1550_v23 = vcombine.low %v2042_v40, %v2042_v40 }
 0x1cc   : > { %1041 = vmatprep.subr.bf16.mxu1 %v1770_v2 }
 0x1cd   : > { %v785_v57 = vsel %vm550_vm5, %v780_v54, %v781_v55 }
 0x1ce   : > { %v786_v58 = vsel %vm783_vm13, %v775_v46, %v785_v57  ;;  %1001 = vmatpush1.bf16.msra.mxu0 %v1552_v24 }
 0x1cf   : > { %v1577_v59 = vcombine.high %v784_v49, %v786_v58  ;;  %v1576_v60 = vcombine.low %v784_v49, %v786_v58  ;;  %1042 = vmatpush1.bf16.msra.mxu1 %v1699_v56 }
 0x1d0   : > { %1057 = vmatprep.subr.bf16.mxu1 %v1770_v2 }
 0x1d1   : > { %1016 = vmatprep.subr.bf16.mxu0 %v1577_v59 }
 0x1d2   : > { %v1700_v61 = vld [vmem:[#allocation3 + $0xc8] ss:$12 sps:$4 sm:$0xff]   ;;  %1017 = vmatpush2.bf16.msra.mxu0 %v1576_v60  ;;  %v1071_v62 = vpop.permute.xlu0 %1070 }
 0x1d3   : > { %1058 = vmatpush2.bf16.msra.mxu1 %v1700_v61 }
 0x1d4   : > { %1616 = vmatprep.subr.bf16.mxu1 %v1780_v47 }
 0x1d5   : > { %1019 = vmatmul.mubr.bf16.vlgmr.msra.gmra.mxu0 %v1550_v23 }
 0x1d6   : > { %1396 = vmatprep.mubr.bf16.mxu0 %v1770_v2  ;;  %1060 = vmatmul.mubr.bf16.vlgmr.msra.gmra.mxu1 %v1550_v23  ;;  %v1092_v1 = vpop.permute.xlu0 %1091 }
 0x1d7   : > { %v1080_v19 = vpop.permute.xlu1 %1079 }
 0x295   : > { %v1020_v63 = vpop.f32.mrf.mxu0 }
 0x296   : > { %v1073_v20 = vmul.f32 %v1071_v62, %v1020_v63  ;;  %v1061_v24 = vpop.f32.mrf.mxu1 }
 0x297   : > { %v1022_v0 = vpop.f32.mrf.mxu0  ;;  %v1075_v3 = vmul.f32 %v1071_v62, %v1061_v24 }
 0x298   : > { %v1082_v4 = vadd.f32 %v1080_v19, %v1073_v20  ;;  %v1074_v5 = vmul.f32 %v1071_v62, %v1022_v0  ;;  %v1063_v6 = vpop.f32.mrf.mxu1 }
 0x299   : > { %v1024_v40 = vpop.f32.mrf.mxu0  ;;  %v1084_v7 = vadd.f32 %v1080_v19, %v1075_v3 }
 0x29a   : > { %vm1085_vm4 = vcmp.ge.f32.partialorder %v1082_v4, 0.0  ;;  %v1094_v8 = vmul.f32 %v1092_v1, %v1082_v4  ;;  %v1083_v10 = vadd.f32 %v1080_v19, %v1074_v5  ;;  %v1064_v11 = vpop.f32.mrf.mxu1 }
 0x29b   : > { %v1025_v12 = vpop.f32.mrf.mxu0  ;;  %vm1087_vm14 = vcmp.ge.f32.partialorder %v1084_v7, 0.0  ;;  %v1096_v13 = vmul.f32 %v1092_v1, %v1084_v7 }
 0x29c   : > { %vm1086_vm8 = vcmp.ge.f32.partialorder %v1083_v10, 0.0  ;;  %v1095_v14 = vmul.f32 %v1092_v1, %v1083_v10  ;;  %v1065_v15 = vpop.f32.mrf.mxu1  ;;  %v1097_v16 = vsel %vm1085_vm4, %v1082_v4, %v1094_v8 }
 0x29d   : > { %v1099_v17 = vsel %vm1087_vm14, %v1084_v7, %v1096_v13  ;;  %v1100_v22 = vsel %vm1939_vm10, %v1097_v16, 0.0  ;;  %vm1781_vm10 = vmmov 0  }
 0x29e   : > { %v1098_v18 = vsel %vm1086_vm8, %v1083_v10, %v1095_v14  ;;  %v1102_v21 = vsel %vm1947_vm12, %v1099_v17, 0.0  ;;  %1626 = vmatprep.mubr.msk.bf16.mxu1 %vm1781_vm10, %v1780_v47  ;;  %vm2300_vm12 = vcmask 1031168  }
 0x29f   : > { %v1101_v25 = vsel %vm1943_vm11, %v1098_v18, 0.0  ;;  %v1609_v26 = vpack.c.bf16 %v1102_v21, %v1102_v21  ;;  %vm2299_vm11 = vcmask 883712  }
 0x2a0   : > { %v1608_v27 = vpack.c.bf16 %v1101_v25, %v1100_v22 }
 0x2a1   : > { %1117 = vrot.lane.b32.xlu0 %v1609_v26, %s1771_s27 }
 0x2a2   : > { %1115 = vrot.lane.b32.xlu1 %v1608_v27, %s1771_s27  ;;  %s2295_s27 = smov 108  }
 0x313   : > { %v1118_v30 = vpop.permute.xlu0 %1117 }
 0x314   : > { %v1116_v28 = vpop.permute.xlu1 %1115 }
 0x315   : > { %v1119_v29 = vrot.slane %v1116_v28, 4 }
 0x317   : > { %v1120_v31 = vsel %vm501_vm15, %v1119_v29, %v1116_v28  ;;  %v1121_v53 = vsel %vm501_vm15, %v1119_v29, %v1118_v30  ;;  %vm2301_vm15 = vcmask 900096  }
 0x318   : > { %1124 = vst.msk [vmem:[#allocation4] sm:$0xff] %vm1967_vm0, %v1120_v31  ;;  %vm2302_vm0 = vcmask 1039360  }
 0x319   : > { %1125 = vst.msk [vmem:[#allocation4 + $0x8] sm:$0xf] %vm514_vm1, %v1121_v53  ;;  %vm1350_vm1 = vcmask 588800  }
 0x31a   : > { %1126 = vst.msk [vmem:[#allocation4 + $0x8] sm:$0xf] %vm518_vm2, %v1770_v2  ;;  %vm1465_vm2 = vcmask 261120  }
 0x31f   : > { %v2140_v50 = vld [vmem:[#allocation4] sm:$0xff] }
 0x320   : > { %1247 = vrot.lane.b32.xlu1 %v2140_v50, %s1779_s21 }
 0x321   : > { %v1244_v32 = vld [vmem:[#allocation4 + $0x8] sm:$0xf] }
 0x322   : > { %1249 = vrot.lane.b32.xlu0 %v1244_v32, %s1779_s21  ;;  %v1212_v33 = vld [vmem:[#allocation4 + $0x8] sm:$0xf]  ;;  %s1782_s21 = smov [#allocation6]  }
 0x323   : > { %v1228_v9 = vld [vmem:[#allocation4 + $0x8] sm:$0xf]  ;;  %s1712_s25 = sshll.u32 %s1782_s21, 4  ;;  %s1713_s25 = int_to_ptr.vmem [resolvable:$false] %s1712_s25 }
 0x324   : > { %1215 = vrot.lane.b32.xlu1 %v2140_v50, %s1773_s29  ;;  %v1180_v2 = vld [vmem:[#allocation4 + $0x8] sm:$0xf] }
 0x325   : > { %v1196_v34 = vld [vmem:[#allocation4 + $0x8] sm:$0xf] }
 0x326   : > { %1217 = vrot.lane.b32.xlu0 %v1212_v33, %s1773_s29  ;;  %v1128_v35 = vld [vmem:[#allocation4 + $0x8] sm:$0xf]  ;;  %s2296_s29 = smov 126  }
 0x327   : > { %1130 = vst.msk [vmem:[#allocation5 + $0x8] sm:$0xf] %vm526_vm3, %v1128_v35  ;;  %v1148_v36 = vld [vmem:[#allocation4 + $0x8] sm:$0xf] }
 0x328   : > { %1231 = vrot.lane.b32.xlu1 %v2140_v50, %s1772_s28  ;;  %v1164_v37 = vld [vmem:[#allocation4 + $0x8] sm:$0xf] }
 0x329   : > { %v1132_v38 = vld [vmem:[#allocation4 + $0x8] sm:$0xf] }
 0x32a   : > { %1233 = vrot.lane.b32.xlu0 %v1228_v9, %s1772_s28  ;;  %s2297_s28 = smov 110  }
 0x32c   : > { %1183 = vrot.lane.b32.xlu1 %v2140_v50, %s1775_s11 }
 0x32e   : > { %1185 = vrot.lane.b32.xlu0 %v1180_v2, %s1775_s11 }
 0x330   : > { %1199 = vrot.lane.b32.xlu1 %v2140_v50, %s2295_s27 }
 0x332   : > { %1201 = vrot.lane.b32.xlu0 %v1196_v34, %s2295_s27  ;;  %s1630_s27 = smul.u32 24, %s350_s26 }
 0x334   : > { %1151 = vrot.lane.b32.xlu1 %v2140_v50, %s2296_s29 }
 0x336   : > { %1153 = vrot.lane.b32.xlu0 %v1148_v36, %s2296_s29  ;;  %s1638_s29 = smul.u32 384, %s1859_s17  ;;  %s1468_s17 = scalar_lea.sflag [#allocation7], %s350_s26 }
 0x338   : > { %1167 = vrot.lane.b32.xlu1 %v2140_v50, %s2297_s28  ;;  %s2215_s18 = scalar_lea.hbm %s2266_s10, %s1638_s29 }
 0x33a   : > { %1169 = vrot.lane.b32.xlu0 %v1164_v37, %s2297_s28  ;;  %s352_s28 = scalar_lea.vmem [#allocation6], %s1630_s27  ;;  %s1714_s27 = scalar_lea.vmem %s1713_s25, 768 }
 0x33c   : > { %1135 = vrot.lane.b32.xlu1 %v2140_v50, %s2298_s30 }
 0x33e   : > { %1137 = vrot.lane.b32.xlu0 %v1132_v38, %s2298_s30  ;;  %s1482_s30 = sshll.u32 %s352_s28, 4  ;;  %s2217_s30 = int_to_ptr.vmem [resolvable:$true] %s1482_s30 }
 0x33f   : > { %s1708_s20 = scalar_lea.vmem %s2217_s30, 384  ;;  %p1715_p0 = scmp.lt.s32.totalorder %s2217_s30, %s1713_s25 }
 0x340   : > { %1448 = vperm.xlu1 %1691, %v1445_v39   ;;  %p1709_p11 = scmp.ne.s32.totalorder %s2217_s30, %s1708_s20  ;;  %p1716_p1 = scmp.lt.s32.totalorder %s1714_s27, %s1708_s20 }
 0x342   : > { %1457 = vperm.xlu0 %1690, %v1454_v41   ;;  %p1710_p12 = pnand %p1709_p11, %p1876_p5  ;;  %p1717_p2 = por %p1716_p1, %p1715_p0 }
 0x344   : > { %p1711_p13 = pneg %p1710_p12 }
 0x346   : > { %p1718_p3 = pnand %p1717_p2, %p1711_p13 }
 0x392   : > { %v1248_v42 = vpop.permute.xlu1 %1247 }
 0x393   : > { %v1251_v43 = vrot.slane %v1248_v42, 4 }
 0x394   : > { %v1250_v44 = vpop.permute.xlu0 %1249 }
 0x395   : > { %v1252_v45 = vrot.slane %v1250_v44, 4  ;;  %1258 = vst.msk [vmem:[#allocation5 + $0x68] sm:$0xf] %vm526_vm3, %v1250_v44  ;;  %v1259_v44 = vld [vmem:[%s2258_s2] sm:$0xf] }
 0x396   : > { %v1216_v48 = vpop.permute.xlu1 %1215 }
 0x397   : > { %v1253_v46 = vsel %vm550_vm5, %v1251_v43, %v1252_v45  ;;  %v1219_v51 = vrot.slane %v1216_v48, 4 }
 0x398   : > { %v1254_v49 = vsel %vm783_vm13, %v1248_v42, %v1253_v46  ;;  %v1218_v52 = vpop.permute.xlu0 %1217 }
 0x399   : > { %v1220_v54 = vrot.slane %v1218_v52, 4  ;;  %1226 = vst.msk [vmem:[#allocation5 + $0x50] sm:$0xf] %vm526_vm3, %v1218_v52  ;;  %v1596_v55 = vcombine.high %v1254_v49, %v1254_v49  ;;  %v1595_v56 = vcombine.low %v1254_v49, %v1254_v49 }
 0x39a   : > { %v1232_v58 = vpop.permute.xlu1 %1231 }
 0x39b   : > { %v1221_v57 = vsel %vm550_vm5, %v1219_v51, %v1220_v54  ;;  %1598 = vmatprep.subr.msk.bf16.mxu0 %vm550_vm5, %v1596_v55  ;;  %v1356_v59 = vsel %vm550_vm5, %v1595_v56, 0  ;;  %v1235_v23 = vrot.slane %v1232_v58, 4 }
 0x39c   : > { %v1222_v60 = vsel %vm717_vm7, %v1216_v48, %v1221_v57  ;;  %v1234_v61 = vpop.permute.xlu0 %1233  ;;  %v1703_v62 = vld [vmem:[#allocation5 + $0x68] ss:$0 sps:$4 sm:$0xff]   ;;  %1371 = vmatpush1.bf16.msra.mxu0 %v1356_v59 }
 0x39d   : > { %v1236_v63 = vrot.slane %v1234_v61, 4  ;;  %1242 = vst.msk [vmem:[#allocation5 + $0x5c] sm:$0xf] %vm526_vm3, %v1234_v61  ;;  %v1362_v19 = vsel %vm550_vm5, %v1703_v62, 0 }
 0x39e   : > { %v1184_v24 = vpop.permute.xlu1 %1183  ;;  %1617 = vmatpush3.bf16.msra.mxu1 %v1362_v19 }
 0x39f   : > { %v1237_v20 = vsel %vm550_vm5, %v1235_v23, %v1236_v63  ;;  %v1187_v1 = vrot.slane %v1184_v24, 4  ;;  %1618 = vmatprep.subr.bf16.mxu1 %v1780_v47 }
 0x3a0   : > { %v1238_v0 = vsel %vm750_vm6, %v1232_v58, %v1237_v20  ;;  %v1186_v3 = vpop.permute.xlu0 %1185 }
 0x3a1   : > { %v1188_v4 = vrot.slane %v1186_v3, 4  ;;  %1194 = vst.msk [vmem:[#allocation5 + $0x38] sm:$0xf] %vm526_vm3, %v1186_v3  ;;  %v1592_v5 = vcombine.low %v1222_v60, %v1238_v0  ;;  %v1593_v6 = vcombine.high %v1222_v60, %v1238_v0 }
 0x3a2   : > { %v1200_v7 = vpop.permute.xlu1 %1199 }
 0x3a3   : > { %v1189_v40 = vsel %vm550_vm5, %v1187_v1, %v1188_v4  ;;  %1372 = vmatprep.subr.bf16.mxu0 %v1593_v6  ;;  %v1203_v10 = vrot.slane %v1200_v7, 4 }
 0x3a4   : > { %v1190_v8 = vsel %vm651_vm9, %v1184_v24, %v1189_v40  ;;  %v1202_v11 = vpop.permute.xlu0 %1201  ;;  %v1704_v12 = vld [vmem:[#allocation5 + $0x50] ss:$12 sps:$4 sm:$0xff]   ;;  %1373 = vmatpush1.bf16.msra.mxu0 %v1592_v5 }
 0x3a5   : > { %v1204_v13 = vrot.slane %v1202_v11, 4  ;;  %1210 = vst.msk [vmem:[#allocation5 + $0x44] sm:$0xf] %vm526_vm3, %v1202_v11  ;;  %1619 = vmatpush3.bf16.msra.mxu1 %v1704_v12 }
 0x3a6   : > { %v1152_v15 = vpop.permute.xlu1 %1151  ;;  %1620 = vmatprep.subr.bf16.mxu1 %v1780_v47 }
 0x3a7   : > { %v1205_v14 = vsel %vm550_vm5, %v1203_v10, %v1204_v13  ;;  %v1155_v17 = vrot.slane %v1152_v15, 4 }
 0x3a8   : > { %v1206_v16 = vsel %vm2299_vm11, %v1200_v7, %v1205_v14  ;;  %v1154_v18 = vpop.permute.xlu0 %1153 }
 0x3a9   : > { %v1156_v21 = vrot.slane %v1154_v18, 4  ;;  %1162 = vst.msk [vmem:[#allocation5 + $0x20] sm:$0xf] %vm526_vm3, %v1154_v18  ;;  %v1589_v22 = vcombine.low %v1190_v8, %v1206_v16  ;;  %v1590_v25 = vcombine.high %v1190_v8, %v1206_v16 }
 0x3aa   : > { %v1168_v27 = vpop.permute.xlu1 %1167 }
 0x3ab   : > { %v1157_v26 = vsel %vm550_vm5, %v1155_v17, %v1156_v21  ;;  %1374 = vmatprep.subr.bf16.mxu0 %v1590_v25  ;;  %v1171_v29 = vrot.slane %v1168_v27, 4 }
 0x3ac   : > { %v1158_v28 = vsel %vm2300_vm12, %v1152_v15, %v1157_v26  ;;  %v1170_v30 = vpop.permute.xlu0 %1169  ;;  %v1705_v31 = vld [vmem:[#allocation5 + $0x38] ss:$12 sps:$4 sm:$0xff]   ;;  %1375 = vmatpush1.bf16.msra.mxu0 %v1589_v22 }
 0x3ad   : > { %v1172_v53 = vrot.slane %v1170_v30, 4  ;;  %1178 = vst.msk [vmem:[#allocation5 + $0x2c] sm:$0xf] %vm526_vm3, %v1170_v30  ;;  %1621 = vmatpush3.bf16.msra.mxu1 %v1705_v31 }
 0x3ae   : > { %v1136_v33 = vpop.permute.xlu1 %1135  ;;  %1622 = vmatprep.subr.bf16.mxu1 %v1780_v47 }
 0x3af   : > { %v1173_v32 = vsel %vm550_vm5, %v1171_v29, %v1172_v53  ;;  %v1139_v2 = vrot.slane %v1136_v33, 4 }
 0x3b0   : > { %v1174_v9 = vsel %vm2301_vm15, %v1168_v27, %v1173_v32  ;;  %v1138_v34 = vpop.permute.xlu0 %1137 }
 0x3b1   : > { %v1140_v35 = vrot.slane %v1138_v34, 4  ;;  %1146 = vst.msk [vmem:[#allocation5 + $0x14] sm:$0xf] %vm526_vm3, %v1138_v34  ;;  %v1586_v36 = vcombine.low %v1158_v28, %v1174_v9  ;;  %v1587_v37 = vcombine.high %v1158_v28, %v1174_v9 }
 0x3b3   : > { %v1141_v38 = vsel %vm550_vm5, %v1139_v2, %v1140_v35  ;;  %1376 = vmatprep.subr.bf16.mxu0 %v1587_v37 }
 0x3b4   : > { %v1142_v39 = vsel %vm2302_vm0, %v1136_v33, %v1141_v38  ;;  %v1706_v41 = vld [vmem:[#allocation5 + $0x20] ss:$12 sps:$4 sm:$0xff]   ;;  %1377 = vmatpush1.bf16.msra.mxu0 %v1586_v36 }
 0x3b5   : > { %v1583_v42 = vcombine.low %v2140_v50, %v1142_v39  ;;  %v1584_v43 = vcombine.high %v2140_v50, %v1142_v39  ;;  %1623 = vmatpush3.bf16.msra.mxu1 %v1706_v41 }
 0x3b6   : > { %1624 = vmatprep.subr.bf16.mxu1 %v1780_v47 }
 0x3b7   : > { %1378 = vmatprep.subr.bf16.mxu0 %v1584_v43 }
 0x3b8   : > { %v1707_v45 = vld [vmem:[#allocation5 + $0x8] ss:$12 sps:$4 sm:$0xff]   ;;  %1379 = vmatpush1.bf16.msra.mxu0 %v1583_v42 }
 0x3b9   : > { %1625 = vmatpush3.bf16.msra.mxu1 %v1707_v45 }
 0x3bb   : > { %1599 = vmatmul.mubr.msk.bf16.vlgmr.msra.gmra.mxu0 %vm1350_vm1, %v1259_v44  ;;  %v1449_v46 = vpop.permute.xlu1 %1448 }
 0x3bc   : > { %1627 = vmatmul.mubr.msk.bf16.vlgmr.msra.gmra.mxu1 %vm1350_vm1, %v1259_v44 }
 0x3bd   : > { %v1458_v50 = vpop.permute.xlu0 %1457 }
 0x47b   : > { %v1398_v48 = vpop.f32.mrf.mxu0 }
 0x47c   : > { %v1451_v49 = vmul.f32 %v1449_v46, %v1398_v48  ;;  %v1439_v51 = vpop.f32.mrf.mxu1 }
 0x47d   : > { %v1400_v47 = vpop.f32.mrf.mxu0  ;;  %v1453_v52 = vmul.f32 %v1449_v46, %v1439_v51 }
 0x47e   : > { %v1460_v54 = vadd.f32 %v1458_v50, %v1451_v49  ;;  %v1452_v55 = vmul.f32 %v1449_v46, %v1400_v47  ;;  %v1628_v56 = vpop.f32.mrf.mxu1 }
 0x47f   : > { %v1402_v57 = vpop.f32.mrf.mxu0  ;;  %v1462_v58 = vadd.f32 %v1458_v50, %v1453_v52 }
 0x480   : > { %1463 = vst [vmem:[%s352_s28] sm:$0xff] %v1460_v54  ;;  %v1461_v59 = vadd.f32 %v1458_v50, %v1452_v55  ;;  %v1442_v60 = vpop.f32.mrf.mxu1 }
 0x481   : > { %v1403_v23 = vpop.f32.mrf.mxu0  ;;  %1466 = vst.msk [vmem:[%s352_s28 + $0x10] sm:$0xff] %vm1465_vm2, %v1462_v58 }
 0x482   : > { %1464 = vst [vmem:[%s352_s28 + $0x8] sm:$0xff] %v1461_v59  ;;  %v1629_v61 = vpop.f32.mrf.mxu1 }
 0x483   : > { %1721 = shalt.err (!%p1718_p3)
}
 0x484   : > { %s1722_s29 = scalar_lea.hbm %s2215_s18, 384  ;;  %s1726_s11 = scalar_lea.hbm %s2266_s10, 768 }
 0x485   : > { %p1723_p4 = scmp.ne.s32.totalorder %s2215_s18, %s1722_s29  ;;  %p1727_p9 = scmp.lt.s32.totalorder %s2215_s18, %s2266_s10 }
 0x486   : > { %p1728_p10 = scmp.lt.s32.totalorder %s1726_s11, %s1722_s29 }
 0x487   : > { %p1724_p7 = pnand %p1723_p4, %p1876_p5 }
 0x488   : > { %p1729_p11 = por %p1728_p10, %p1727_p9 }
 0x489   : > { %p1725_p8 = pneg %p1724_p7 }
 0x48b   : > { %p1730_p12 = pnand %p1729_p11, %p1725_p8 }
 0x48d   : > { %1733 = shalt.err (!%p1730_p12)
}
 0x48e   : > { %1639 = dma.vmem_to_hbm [thread:$0]  (%p1876_p5), %s2217_s30, 384, %s2215_s18, %s1468_s17  }
 0x48f PF: > { %p1645_p13 = scmp.ge.s32.totalorder %s1768_s16, 2  ;;  %s1494_s20 = sand.u32 1, %s1756_s13  }
 0x490   : > { %s1495_s25 = scalar_lea.sflag [#allocation7], %s1494_s20 }
 0x491   : > { %p1642_p0 = pnand %p1645_p13, %p1880_p6 }
 0x493   : > { %p1643_p1 = pneg %p1642_p0 }
 0x495   : > { %1751 = dma.done.wait (%p1643_p1), %s1495_s25, 384  }
 0x496   : > { %1753 = vsyncadd (%p1643_p1), %s1495_s25, 4294966912  ;;  %p20_p2 = scmp.ge.s32.totalorder %s1863_s19, 4   ;;  %s2303_s13 = smov %s1760_s14 }
 0x497   : > { %s2304_s14 = smov %s1764_s15  ;;  %s2305_s15 = smov %s1874_s22 }
 0x498   : > { %s2306_s16 = smov %s1863_s19  ;;  %22 = sbr.rel (!%p20_p2) target bundleno = 3 (0x3), region = 95 }
 0x49d   :  { %1500 = vsyncpa [#allocation7], 1 }
 0x49e   :  { %1502 = vsyncpa [#allocation7 + $0x1], 1 }

</bundles_post_ra>
